<compile_context>
chip_gen: v5e
topology: v5e:2x2
jax: 0.10.0
libtpu: 0.0.40
codegen_flags: <defaults>
</compile_context>

<pallas_src>
import math

import jax
import jax.numpy as jnp
from jax.experimental import pallas as pl
from jax.experimental.pallas import tpu as pltpu

LANE = 128
_TARGET_TILE_BYTES = 4 * 1024 * 1024      # ~4 MiB x/out tiles (safe in v7x VMEM)
_SMALL_FALLBACK_BYTES = 1 * 1024 * 1024   # tiny tensors: fused XLA add is cheaper
_VMEM_LIMIT_CAP = 48 * 1024 * 1024        # stay well under v7x's 64 MiB physical


def _pe_add_kernel(x_ref, pe_ref, o_ref):
    # x_ref: (Bb, S_tile, D) in x.dtype; pe_ref: (S_tile, D) in f32.
    # f32 accumulate + downcast is free (VPU idle in this DMA-bound kernel).
    o_ref[...] = (x_ref[...].astype(jnp.float32) + pe_ref[...]).astype(o_ref.dtype)


def make_positional_table(max_length: int, d_model: int) -> jnp.ndarray:
    """Deterministic sinusoidal table, matching the PyTorch __init__ exactly."""
    max_length = max_length + 10
    pos = jnp.arange(0.0, max_length, dtype=jnp.float32)[:, None]            # (L, 1)
    div_term = jnp.exp(
        jnp.arange(0.0, d_model, 2, dtype=jnp.float32)
        * -(math.log(10000.0) / d_model)
    )                                                                         # (D/2,)
    angles = pos * div_term                                                   # (L, D/2)
    pe = jnp.zeros((max_length, d_model), dtype=jnp.float32)
    pe = pe.at[:, 0::2].set(jnp.sin(angles))
    pe = pe.at[:, 1::2].set(jnp.cos(angles))
    return pe                                                                 # (L, D)


def positional_embedding_forward(x: jnp.ndarray, pe: jnp.ndarray) -> jnp.ndarray:
    """x: (B, S, D); pe: (max_length+10, D) f32. Returns x + pe[:S] (dropout=identity)."""
    B, S, D = x.shape
    itemsize = x.dtype.itemsize
    total_bytes = B * S * D * itemsize

    if (D % LANE != 0) or (total_bytes < _SMALL_FALLBACK_BYTES):
        # TODO(synk): small / non-lane-aligned-D shapes stay on the fused XLA
        # add (a lane-dense re-tiling of x would cost an extra HBM copy and the
        # pallas_call launch overhead dominates for tiny tensors).
        return (x.astype(jnp.float32) + pe[None, :S, :]).astype(x.dtype)

    # ---- choose (Bb, S_tile) so one x tile is ~_TARGET_TILE_BYTES ------------
    row_bytes = D * itemsize
    max_rows = max(1, _TARGET_TILE_BYTES // row_bytes)
    if S <= max_rows:
        s_tile = S                                   # full extent: layout-legal
        bb = max(1, min(B, max_rows // S))           # batch blocking
    else:
        s_tile = min(S, max(32, (max_rows // 32) * 32))   # 32-sublane aligned
        bb = 1

    n_s = pl.cdiv(S, s_tile)
    n_b = pl.cdiv(B, bb)
    if n_s * n_b == 1 and B >= 2:
        bb = (B + 1) // 2                            # keep both v7x TCs busy
        n_b = pl.cdiv(B, bb)

    # pe block legality: second-minor block dim must be a multiple of 8 or the
    # full extent of the pe operand.  Only slice when strictly necessary.
    if s_tile % 8 == 0 or s_tile == pe.shape[0]:
        pe_in = pe                                   # no per-call slice/cast
    else:
        pe_in = pe[:S, :]

    x_tile_bytes = bb * s_tile * D * itemsize
    pe_tile_bytes = s_tile * D * pe_in.dtype.itemsize
    vmem_limit = int(min(
        _VMEM_LIMIT_CAP,
        max(32 * 1024 * 1024,
            2 * (2 * x_tile_bytes + pe_tile_bytes) + (4 << 20)),
    ))

    return pl.pallas_call(
        _pe_add_kernel,
        out_shape=jax.ShapeDtypeStruct((B, S, D), x.dtype),
        grid_spec=pltpu.PrefetchScalarGridSpec(
            num_scalar_prefetch=0,
            grid=(n_s, n_b),                         # batch innermost: pe tile reused
            in_specs=[
                pl.BlockSpec((bb, s_tile, D), lambda t, b: (b, t, 0)),   # x
                pl.BlockSpec((s_tile, D), lambda t, b: (t, 0)),          # pe (f32)
            ],
            out_specs=pl.BlockSpec((bb, s_tile, D), lambda t, b: (b, t, 0)),
        ),
        compiler_params=pltpu.CompilerParams(
            dimension_semantics=("parallel", "parallel"),
            vmem_limit_bytes=vmem_limit,
        ),
    )(x, pe_in)


if __name__ == "__main__":
    key = jax.random.PRNGKey(0)
    k0, k1 = jax.random.split(key)

    # Case 1: tiny shapes consistent with the module (fused-add fallback path).
    B0, S0, D0, max_len0 = 2, 8, 32, 16
    x0 = jax.random.normal(k0, (B0, S0, D0), dtype=jnp.float32)
    pe0 = make_positional_table(max_len0, D0)
    out0 = positional_embedding_forward(x0, pe0)
    jax.block_until_ready(out0)
    ref0 = x0 + pe0[None, :S0, :]
    assert out0.shape == (B0, S0, D0)
    assert jnp.allclose(out0, ref0, atol=1e-6), "fallback path mismatch"

    # Case 2: still small, but exercises the Pallas kernel path
    # (D % 128 == 0, 4*1024*128*4 B = 2 MiB > fallback threshold).
    B1, S1, D1, max_len1 = 4, 1024, 128, 1024
    x1 = jax.random.normal(k1, (B1, S1, D1), dtype=jnp.float32)
    pe1 = make_positional_table(max_len1, D1)
    out1 = positional_embedding_forward(x1, pe1)
    jax.block_until_ready(out1)
    ref1 = x1 + pe1[None, :S1, :]
    assert out1.shape == (B1, S1, D1)
    assert jnp.allclose(out1, ref1, atol=1e-5), "kernel path mismatch"

    print("KERNEL_OK")
</pallas_src>

<mosaic_0001>
module attributes {stable_mosaic.version = 11 : i64} {
  func.func @_pe_add_kernel(%arg0: i32, %arg1: i32, %arg2: memref<2x1024x128xf32, #tpu.memory_space<vmem>>, %arg3: memref<1024x128xf32, #tpu.memory_space<vmem>>, %arg4: memref<2x1024x128xf32, #tpu.memory_space<vmem>>) attributes {dimension_semantics = [#tpu.dimension_semantics<parallel>, #tpu.dimension_semantics<parallel>], iteration_bounds = array<i64: 1, 2>, scalar_prefetch = 0 : i64, scratch_operands = 0 : i64, tpu.core_type = #tpu.core_type<tc>, window_params = [{transform_indices = @transform_0, window_bounds = array<i64: 2, 1024, 128>}, {transform_indices = @transform_1, window_bounds = array<i64: 1024, 128>}, {transform_indices = @transform_2, window_bounds = array<i64: 2, 1024, 128>}]} {
    %c0 = arith.constant 0 : index
    %c0_0 = arith.constant 0 : index
    %c0_1 = arith.constant 0 : index
    %0 = vector.load %arg2[%c0, %c0_0, %c0_1] : memref<2x1024x128xf32, #tpu.memory_space<vmem>>, vector<2x1024x128xf32>
    %c0_2 = arith.constant 0 : index
    %c0_3 = arith.constant 0 : index
    %1 = vector.load %arg3[%c0_2, %c0_3] : memref<1024x128xf32, #tpu.memory_space<vmem>>, vector<1024x128xf32>
    %2 = vector.shape_cast %1 : vector<1024x128xf32> to vector<1x1024x128xf32>
    %3 = vector.broadcast %2 : vector<1x1024x128xf32> to vector<2x1024x128xf32>
    %4 = arith.addf %0, %3 : vector<2x1024x128xf32>
    %c0_4 = arith.constant 0 : index
    %c0_5 = arith.constant 0 : index
    %c0_6 = arith.constant 0 : index
    %5 = vector.load %arg4[%c0_4, %c0_5, %c0_6] : memref<2x1024x128xf32, #tpu.memory_space<vmem>>, vector<2x1024x128xf32>
    tpu.vector_store %arg4[%c0_4, %c0_5, %c0_6], %4 {strides = array<i32>} : memref<2x1024x128xf32, #tpu.memory_space<vmem>>, vector<2x1024x128xf32>,
    return
  }
  func.func @transform_0(%arg0: i32, %arg1: i32) -> (i32, i32, i32) {
    %c0_i32 = arith.constant 0 : i32
    %c0_i32_0 = arith.constant 0 : i32
    return %arg1, %arg0, %c0_i32 : i32, i32, i32
  }
  func.func @transform_1(%arg0: i32, %arg1: i32) -> (i32, i32) {
    %c0_i32 = arith.constant 0 : i32
    %c0_i32_0 = arith.constant 0 : i32
    return %arg0, %c0_i32 : i32, i32
  }
  func.func @transform_2(%arg0: i32, %arg1: i32) -> (i32, i32, i32) {
    %c0_i32 = arith.constant 0 : i32
    %c0_i32_0 = arith.constant 0 : i32
    return %arg1, %arg0, %c0_i32 : i32, i32, i32
  }
}

</mosaic_0001>

<bundles_post_ra>
// kernel: tpu_custom_call.1
= control target key start
LH: loop header
LB: loop body
LE: loop exit
PB: predicated region body
PF: predicated region fallthrough
CT: control target
= control target key end

     0   :  { %7 = vsyncpa [#allocation3], 0  ;;  %s2678_s0 = inlined_call_operand.hbm [shape: f32[4,1024,128], index: 0, kind: input, shape index: {}]   ;;  %s2679_s1 = inlined_call_operand.hbm [shape: f32[1034,128], index: 1, kind: input, shape index: {}]   ;;  %s2680_s2 = inlined_call_operand.hbm [shape: f32[4,1024,128], index: 2, kind: output, shape index: {}]  }
   0x1   :  { %9 = vsyncpa [#allocation3 + $0x1], 0 }
   0x2   :  { %10 = vsyncpa [#allocation6], 0 }
   0x3   :  { %11 = vsyncpa [#allocation4], 0 }
   0x4   :  { %13 = vsyncpa [#allocation4 + $0x1], 0  ;;  %s1510_s9 = smov 0   ;;  %s1512_s10 = smov 0  }
   0x5   :  { %s1514_s11 = smov 0   ;;  %s1516_s12 = smov 0  }
   0x6   :  { %s1518_s13 = smov 0   ;;  %s1520_s14 = smov 0  }
   0x7 LB: > { %s1238_s15 = sadd.s32 4294967295, %s1488_s14   ;;  %s1239_s16 = sadd.s32 4294967294, %s1488_s14   ;;  %s1488_s14 = sphi %s1520_s14, %s19_s14   ;;  %s1484_s13 = sphi %s1518_s13, %s2920_s13   ;;  %s1480_s12 = sphi %s1516_s12, %s2919_s12   ;;  %s1476_s11 = sphi %s1514_s11, %s2918_s11   ;;  %s1472_s10 = sphi %s1512_s10, %s2917_s10   ;;  %s1468_s9 = sphi %s1510_s9, %s2916_s9  }
   0x8   : > { %p53_p0 = scmp.ne.s32.totalorder %s1472_s10, %s1468_s9  ;;  %p1544_p1 = scmp.eq.s32.totalorder %s1238_s15, 0 }
   0x9   : > { %p1548_p2 = scmp.eq.s32.totalorder %s1238_s15, 1  ;;  %p111_p3 = scmp.eq.s32.totalorder %s1239_s16, 1 }
   0xa   : > { %p1554_p4 = por %p1544_p1, %p53_p0  ;;  %p1240_p5 = scmp.ge.s32.totalorder %s1488_s14, 1 }
   0xb   : > { %p1559_p6 = por %p111_p3, %p53_p0  ;;  %p118_p7 = scmp.lt.s32.totalorder %s1488_s14, 3 }
   0xc   : > { %s139_s23 = sshll.u32 %s2679_s1, 4  ;;  %s1490_s25 = smov [#allocation5]   ;;  %s140_s23 = int_to_ptr.hbm [resolvable:$true] %s139_s23 }
   0xd   : > { %p1567_p8 = pnand %p1240_p5, %p118_p7  ;;  %s141_s26 = sshll.u32 %s1490_s25, 4  ;;  %s142_s26 = int_to_ptr.vmem [resolvable:$true] %s141_s26 }
   0xe   : > { %p1242_p11 = scmp.ge.s32.totalorder %s1488_s14, 2  ;;  %s1491_s27 = smov 128  }
   0xf   : > { %p1269_p9 = pneg %p1567_p8  ;;  %s1492_s28 = smov 8  }
  0x10   : > { %s28_s29 = sadd.s32 1, %s1484_s13  ;;  %s40_s30 = sadd.s32 1, %s1476_s11 }
  0x11   : > { %p1270_p10 = pnand %p1269_p9, %p1544_p1  ;;  %p29_p12 = scmp.ge.s32.totalorder %s28_s29, 2 }
  0x12   : > { %p47_p13 = scmp.ne.s32.totalorder %s1476_s11, %s1472_s10  ;;  %p48_p0 = scmp.eq.s32.totalorder %s1488_s14, 0 }
  0x13   : > { %1272 = dma.hbm_to_vmem [thread:$0]  (!%p1270_p10), %s140_s23, 16384, %s142_s26, [#allocation6], %s1491_s27, %s1491_s27, %s1492_s28  }
  0x14   : > { %s2922_s29 = smov (%p29_p12, %s28_s29), 0  ;;  %p1586_p3 = por %p48_p0, %p47_p13 }
  0x15   : > { %p1592_p5 = por %p1548_p2, %p47_p13  ;;  %s35_s5 = ssub.s32 %s1484_s13, %s2922_s29 }
  0x16   : > { %p1282_p7 = scmp.lt.s32.totalorder %s1488_s14, 2  ;;  %p38_p9 = scmp.eq.s32.totalorder %s35_s5, 0 }
  0x17   : > { %s155_s6 = sand.u32 1, %s1476_s11   ;;  %s1258_s15 = sshll.u32 %s1484_s13, 11 }
  0x18   : > { %s1243_s7 = sshll.u32 %s155_s6, 11  ;;  %s167_s22 = scalar_lea.hbm %s2678_s0, %s1258_s15 }
  0x19   : > { %s1601_s8 = scalar_select %p38_p9, %s1476_s11, %s40_s30  }
  0x1a   : > { %s159_s23 = scalar_lea.vmem [#allocation2], %s1243_s7  ;;  %s168_s18 = sshll.u32 %s167_s22, 4  ;;  %s169_s18 = int_to_ptr.hbm [resolvable:$true] %s168_s18 }
  0x1b   : > { %s170_s25 = sshll.u32 %s159_s23, 4  ;;  %p1274_p2 = pnand %p1282_p7, %p1586_p3  ;;  %s171_s25 = int_to_ptr.vmem [resolvable:$true] %s170_s25 }
  0x1c   : > { %s156_s26 = scalar_lea.sflag [#allocation3], %s155_s6  ;;  %182 = sbr.rel (%p1567_p8) target bundleno = 378 (0x17a), region = 28 }
  0x1d   : > { %1276 = dma.hbm_to_vmem [thread:$0]  (!%p1274_p2), %s169_s18, 32768, %s171_s25, %s156_s26, %s1491_s27, %s1491_s27, %s1492_s28  }
  0x21   : > { %s1615_s30 = sand.u32 1, %s1472_s10  }
  0x22   : > { %s1248_s5 = sshll.u32 %s1615_s30, 11  ;;  %s185_s7 = scalar_lea.sflag [#allocation3], %s1615_s30 }
  0x23   : > { %s1619_s15 = scalar_lea.vmem [#allocation2], %s1248_s5 }
  0x24   : > { %1455 = dma.done.wait (%p1554_p4), %s185_s7, 32768  }
  0x25   : > { %1457 = vsyncadd (%p1554_p4), %s185_s7, 4294934528 }
  0x26   : > { %1459 = dma.done.wait (%p1544_p1), [#allocation6], 16384  }
  0x27   : > { %1461 = vsyncadd (%p1544_p1), [#allocation6], 4294950912  ;;  %v224_v0 = vld [vmem:[%s1619_s15] sm:$0xff]  ;;  %v225_v2 = vld [vmem:[%s1619_s15 + $0x8] sm:$0xff]  ;;  %s1634_s17 = scalar_lea.vmem [#allocation7], %s1248_s5  ;;  %s1260_s19 = sshll.u32 %s1480_s12, 11 }
  0x28   : > { %v480_v1 = vld [vmem:[#allocation5] sm:$0xff]  ;;  %v481_v4 = vld [vmem:[#allocation5 + $0x8] sm:$0xff]  ;;  %v226_v5 = vld [vmem:[%s1619_s15 + $0x10] sm:$0xff]  ;;  %s1135_s12 = scalar_lea.hbm %s2680_s2, %s1260_s19  ;;  %s1136_s28 = sshll.u32 %s1634_s17, 4  ;;  %s1137_s28 = int_to_ptr.vmem [resolvable:$true] %s1136_s28 }
  0x29   : > { %v608_v3 = vadd.f32 %v480_v1, %v224_v0  ;;  %v482_v6 = vld [vmem:[#allocation5 + $0x10] sm:$0xff]  ;;  %v609_v7 = vadd.f32 %v481_v4, %v225_v2  ;;  %v227_v9 = vld [vmem:[%s1619_s15 + $0x18] sm:$0xff]  ;;  %v228_v11 = vld [vmem:[%s1619_s15 + $0x20] sm:$0xff]  ;;  %s1138_s3 = sshll.u32 %s1135_s12, 4  ;;  %s1121_s6 = scalar_lea.sflag [#allocation4], %s1615_s30  ;;  %s1139_s3 = int_to_ptr.hbm [resolvable:$true] %s1138_s3 }
  0x2a   : > { %v610_v8 = vadd.f32 %v482_v6, %v226_v5  ;;  %v483_v10 = vld [vmem:[#allocation5 + $0x18] sm:$0xff]  ;;  %v1637_v13 = vld [vmem:[#allocation5 + $0x20] sm:$0xff]  ;;  %v229_v14 = vld [vmem:[%s1619_s15 + $0x28] sm:$0xff]  ;;  %s1416_s16 = sshra.s32 %s1139_s3, 4  ;;  %s1422_s25 = scalar_lea.hbm %s2680_s2, 4096  ;;  %s1417_s16 = int_to_ptr.hbm [resolvable:$true] %s1416_s16 }
  0x2b   : > { %864 = vst [vmem:[%s1634_s17] sm:$0xff] %v608_v3  ;;  %v611_v12 = vadd.f32 %v483_v10, %v227_v9  ;;  %v1640_v15 = vld [vmem:[#allocation5 + $0x28] sm:$0xff]  ;;  %v612_v16 = vadd.f32 %v1637_v13, %v228_v11  ;;  %v230_v18 = vld [vmem:[%s1619_s15 + $0x30] sm:$0xff]  ;;  %v231_v20 = vld [vmem:[%s1619_s15 + $0x38] sm:$0xff]  ;;  %s1418_s21 = scalar_lea.hbm %s1417_s16, 2048  ;;  %p1423_p10 = scmp.lt.s32.totalorder %s1417_s16, %s2680_s2 }
  0x2c   : > { %865 = vst [vmem:[%s1634_s17 + $0x8] sm:$0xff] %v609_v7  ;;  %v613_v17 = vadd.f32 %v1640_v15, %v229_v14  ;;  %v1646_v19 = vld [vmem:[#allocation5 + $0x30] sm:$0xff]  ;;  %v1651_v22 = vld [vmem:[#allocation5 + $0x38] sm:$0xff]  ;;  %v232_v23 = vld [vmem:[%s1619_s15 + $0x40] sm:$0xff]  ;;  %p1419_p1 = scmp.ne.s32.totalorder %s1417_s16, %s1418_s21  ;;  %p1424_p12 = scmp.lt.s32.totalorder %s1422_s25, %s1418_s21 }
  0x2d   : > { %866 = vst [vmem:[%s1634_s17 + $0x10] sm:$0xff] %v610_v8  ;;  %v614_v21 = vadd.f32 %v1646_v19, %v230_v18  ;;  %v1654_v24 = vld [vmem:[#allocation5 + $0x40] sm:$0xff]  ;;  %v615_v25 = vadd.f32 %v1651_v22, %v231_v20  ;;  %v233_v26 = vld [vmem:[%s1619_s15 + $0x48] sm:$0xff]  ;;  %v234_v28 = vld [vmem:[%s1619_s15 + $0x50] sm:$0xff] }
  0x2e   : > { %867 = vst [vmem:[%s1634_s17 + $0x18] sm:$0xff] %v611_v12  ;;  %v1659_v27 = vld [vmem:[#allocation5 + $0x48] sm:$0xff]  ;;  %v616_v29 = vadd.f32 %v1654_v24, %v232_v23  ;;  %v1664_v30 = vld [vmem:[#allocation5 + $0x50] sm:$0xff]  ;;  %v235_v31 = vld [vmem:[%s1619_s15 + $0x58] sm:$0xff]  ;;  %p1420_p4 = pnand %p1419_p1, %p1592_p5  ;;  %p1425_p13 = por %p1424_p12, %p1423_p10 }
  0x2f   : > { %868 = vst [vmem:[%s1634_s17 + $0x20] sm:$0xff] %v612_v16  ;;  %v1667_v32 = vld [vmem:[#allocation5 + $0x58] sm:$0xff]  ;;  %v617_v33 = vadd.f32 %v1659_v27, %v233_v26  ;;  %v236_v34 = vld [vmem:[%s1619_s15 + $0x60] sm:$0xff]  ;;  %v618_v36 = vadd.f32 %v1664_v30, %v234_v28  ;;  %v237_v37 = vld [vmem:[%s1619_s15 + $0x68] sm:$0xff] }
  0x30   : > { %869 = vst [vmem:[%s1634_s17 + $0x28] sm:$0xff] %v613_v17  ;;  %v1672_v35 = vld [vmem:[#allocation5 + $0x60] sm:$0xff]  ;;  %v1677_v38 = vld [vmem:[#allocation5 + $0x68] sm:$0xff]  ;;  %v619_v39 = vadd.f32 %v1667_v32, %v235_v31  ;;  %v238_v40 = vld [vmem:[%s1619_s15 + $0x70] sm:$0xff]  ;;  %p1421_p8 = pneg %p1420_p4 }
  0x31   : > { %870 = vst [vmem:[%s1634_s17 + $0x30] sm:$0xff] %v614_v21  ;;  %v1682_v41 = vld [vmem:[#allocation5 + $0x70] sm:$0xff]  ;;  %v620_v42 = vadd.f32 %v1672_v35, %v236_v34  ;;  %v239_v43 = vld [vmem:[%s1619_s15 + $0x78] sm:$0xff]  ;;  %v621_v45 = vadd.f32 %v1677_v38, %v237_v37  ;;  %v240_v46 = vld [vmem:[%s1619_s15 + $0x80] sm:$0xff] }
  0x32   : > { %871 = vst [vmem:[%s1634_s17 + $0x38] sm:$0xff] %v615_v25  ;;  %v1687_v44 = vld [vmem:[#allocation5 + $0x78] sm:$0xff]  ;;  %v1692_v47 = vld [vmem:[#allocation5 + $0x80] sm:$0xff]  ;;  %v622_v48 = vadd.f32 %v1682_v41, %v238_v40  ;;  %v241_v49 = vld [vmem:[%s1619_s15 + $0x88] sm:$0xff]  ;;  %p1426_p0 = pnand %p1425_p13, %p1421_p8 }
  0x33   : > { %872 = vst [vmem:[%s1634_s17 + $0x40] sm:$0xff] %v616_v29  ;;  %v1697_v50 = vld [vmem:[#allocation5 + $0x88] sm:$0xff]  ;;  %v623_v51 = vadd.f32 %v1687_v44, %v239_v43  ;;  %v242_v52 = vld [vmem:[%s1619_s15 + $0x90] sm:$0xff]  ;;  %v624_v54 = vadd.f32 %v1692_v47, %v240_v46  ;;  %v243_v55 = vld [vmem:[%s1619_s15 + $0x98] sm:$0xff] }
  0x34   : > { %873 = vst [vmem:[%s1634_s17 + $0x48] sm:$0xff] %v617_v33  ;;  %v1702_v53 = vld [vmem:[#allocation5 + $0x90] sm:$0xff]  ;;  %v1707_v56 = vld [vmem:[#allocation5 + $0x98] sm:$0xff]  ;;  %v625_v57 = vadd.f32 %v1697_v50, %v241_v49  ;;  %v244_v58 = vld [vmem:[%s1619_s15 + $0xa0] sm:$0xff] }
  0x35   : > { %874 = vst [vmem:[%s1634_s17 + $0x50] sm:$0xff] %v618_v36  ;;  %v1712_v59 = vld [vmem:[#allocation5 + $0xa0] sm:$0xff]  ;;  %v626_v60 = vadd.f32 %v1702_v53, %v242_v52  ;;  %v245_v61 = vld [vmem:[%s1619_s15 + $0xa8] sm:$0xff]  ;;  %v627_v63 = vadd.f32 %v1707_v56, %v243_v55  ;;  %v246_v0 = vld [vmem:[%s1619_s15 + $0xb0] sm:$0xff] }
  0x36   : > { %875 = vst [vmem:[%s1634_s17 + $0x58] sm:$0xff] %v619_v39  ;;  %v1717_v62 = vld [vmem:[#allocation5 + $0xa8] sm:$0xff]  ;;  %v1722_v1 = vld [vmem:[#allocation5 + $0xb0] sm:$0xff]  ;;  %v628_v2 = vadd.f32 %v1712_v59, %v244_v58  ;;  %v247_v3 = vld [vmem:[%s1619_s15 + $0xb8] sm:$0xff] }
  0x37   : > { %876 = vst [vmem:[%s1634_s17 + $0x60] sm:$0xff] %v620_v42  ;;  %v1727_v4 = vld [vmem:[#allocation5 + $0xb8] sm:$0xff]  ;;  %v629_v5 = vadd.f32 %v1717_v62, %v245_v61  ;;  %v248_v6 = vld [vmem:[%s1619_s15 + $0xc0] sm:$0xff]  ;;  %v630_v8 = vadd.f32 %v1722_v1, %v246_v0  ;;  %v249_v9 = vld [vmem:[%s1619_s15 + $0xc8] sm:$0xff] }
  0x38   : > { %877 = vst [vmem:[%s1634_s17 + $0x68] sm:$0xff] %v621_v45  ;;  %v1732_v7 = vld [vmem:[#allocation5 + $0xc0] sm:$0xff]  ;;  %v1737_v10 = vld [vmem:[#allocation5 + $0xc8] sm:$0xff]  ;;  %v631_v11 = vadd.f32 %v1727_v4, %v247_v3  ;;  %v250_v12 = vld [vmem:[%s1619_s15 + $0xd0] sm:$0xff] }
  0x39   : > { %878 = vst [vmem:[%s1634_s17 + $0x70] sm:$0xff] %v622_v48  ;;  %v1742_v14 = vld [vmem:[#allocation5 + $0xd0] sm:$0xff]  ;;  %v632_v16 = vadd.f32 %v1732_v7, %v248_v6  ;;  %v251_v17 = vld [vmem:[%s1619_s15 + $0xd8] sm:$0xff]  ;;  %v633_v20 = vadd.f32 %v1737_v10, %v249_v9  ;;  %v252_v21 = vld [vmem:[%s1619_s15 + $0xe0] sm:$0xff] }
  0x3a   : > { %879 = vst [vmem:[%s1634_s17 + $0x78] sm:$0xff] %v623_v51  ;;  %v1747_v18 = vld [vmem:[#allocation5 + $0xd8] sm:$0xff]  ;;  %v1752_v23 = vld [vmem:[#allocation5 + $0xe0] sm:$0xff]  ;;  %v634_v25 = vadd.f32 %v1742_v14, %v250_v12  ;;  %v253_v26 = vld [vmem:[%s1619_s15 + $0xe8] sm:$0xff] }
  0x3b   : > { %880 = vst [vmem:[%s1634_s17 + $0x80] sm:$0xff] %v624_v54  ;;  %v1757_v28 = vld [vmem:[#allocation5 + $0xe8] sm:$0xff]  ;;  %v635_v29 = vadd.f32 %v1747_v18, %v251_v17  ;;  %v254_v31 = vld [vmem:[%s1619_s15 + $0xf0] sm:$0xff]  ;;  %v636_v34 = vadd.f32 %v1752_v23, %v252_v21  ;;  %v255_v36 = vld [vmem:[%s1619_s15 + $0xf8] sm:$0xff] }
  0x3c   : > { %881 = vst [vmem:[%s1634_s17 + $0x88] sm:$0xff] %v625_v57  ;;  %v1762_v33 = vld [vmem:[#allocation5 + $0xf0] sm:$0xff]  ;;  %v1767_v37 = vld [vmem:[#allocation5 + $0xf8] sm:$0xff]  ;;  %v637_v39 = vadd.f32 %v1757_v28, %v253_v26  ;;  %v256_v40 = vld [vmem:[%s1619_s15 + $0x100] sm:$0xff] }
  0x3d   : > { %882 = vst [vmem:[%s1634_s17 + $0x90] sm:$0xff] %v626_v60  ;;  %v1772_v42 = vld [vmem:[#allocation5 + $0x100] sm:$0xff]  ;;  %v638_v43 = vadd.f32 %v1762_v33, %v254_v31  ;;  %v257_v45 = vld [vmem:[%s1619_s15 + $0x108] sm:$0xff]  ;;  %v639_v48 = vadd.f32 %v1767_v37, %v255_v36  ;;  %v258_v49 = vld [vmem:[%s1619_s15 + $0x110] sm:$0xff] }
  0x3e   : > { %883 = vst [vmem:[%s1634_s17 + $0x98] sm:$0xff] %v627_v63  ;;  %v1777_v46 = vld [vmem:[#allocation5 + $0x108] sm:$0xff]  ;;  %v1782_v51 = vld [vmem:[#allocation5 + $0x110] sm:$0xff]  ;;  %v640_v52 = vadd.f32 %v1772_v42, %v256_v40  ;;  %v259_v54 = vld [vmem:[%s1619_s15 + $0x118] sm:$0xff] }
  0x3f   : > { %884 = vst [vmem:[%s1634_s17 + $0xa0] sm:$0xff] %v628_v2  ;;  %v1787_v55 = vld [vmem:[#allocation5 + $0x118] sm:$0xff]  ;;  %v641_v57 = vadd.f32 %v1777_v46, %v257_v45  ;;  %v260_v58 = vld [vmem:[%s1619_s15 + $0x120] sm:$0xff]  ;;  %v642_v61 = vadd.f32 %v1782_v51, %v258_v49  ;;  %v261_v63 = vld [vmem:[%s1619_s15 + $0x128] sm:$0xff] }
  0x40   : > { %885 = vst [vmem:[%s1634_s17 + $0xa8] sm:$0xff] %v629_v5  ;;  %v1792_v60 = vld [vmem:[#allocation5 + $0x120] sm:$0xff]  ;;  %v1797_v0 = vld [vmem:[#allocation5 + $0x128] sm:$0xff]  ;;  %v643_v2 = vadd.f32 %v1787_v55, %v259_v54  ;;  %v262_v3 = vld [vmem:[%s1619_s15 + $0x130] sm:$0xff] }
  0x41   : > { %886 = vst [vmem:[%s1634_s17 + $0xb0] sm:$0xff] %v630_v8  ;;  %v1802_v5 = vld [vmem:[#allocation5 + $0x130] sm:$0xff]  ;;  %v644_v6 = vadd.f32 %v1792_v60, %v260_v58  ;;  %v263_v8 = vld [vmem:[%s1619_s15 + $0x138] sm:$0xff]  ;;  %v264_v12 = vld [vmem:[%s1619_s15 + $0x140] sm:$0xff] }
  0x42   : > { %887 = vst [vmem:[%s1634_s17 + $0xb8] sm:$0xff] %v631_v11  ;;  %v1807_v9 = vld [vmem:[#allocation5 + $0x138] sm:$0xff]  ;;  %v645_v11 = vadd.f32 %v1797_v0, %v261_v63  ;;  %v646_v17 = vadd.f32 %v1802_v5, %v262_v3  ;;  %v1817_v21 = vld [vmem:[#allocation5 + $0x148] sm:$0xff]  ;;  %v266_v26 = vld [vmem:[%s1619_s15 + $0x150] sm:$0xff] }
  0x43   : > { %888 = vst [vmem:[%s1634_s17 + $0xc0] sm:$0xff] %v632_v16  ;;  %v1812_v16 = vld [vmem:[#allocation5 + $0x140] sm:$0xff]  ;;  %v1827_v36 = vld [vmem:[#allocation5 + $0x158] sm:$0xff]  ;;  %v1837_v49 = vld [vmem:[#allocation5 + $0x168] sm:$0xff] }
  0x44   : > { %889 = vst [vmem:[%s1634_s17 + $0xc8] sm:$0xff] %v633_v20  ;;  %v265_v20 = vld [vmem:[%s1619_s15 + $0x148] sm:$0xff]  ;;  %v648_v31 = vadd.f32 %v1812_v16, %v264_v12  ;;  %v268_v40 = vld [vmem:[%s1619_s15 + $0x160] sm:$0xff]  ;;  %v270_v54 = vld [vmem:[%s1619_s15 + $0x170] sm:$0xff] }
  0x45   : > { %890 = vst [vmem:[%s1634_s17 + $0xd0] sm:$0xff] %v634_v25  ;;  %v647_v25 = vadd.f32 %v1807_v9, %v263_v8  ;;  %v1847_v63 = vld [vmem:[#allocation5 + $0x178] sm:$0xff]  ;;  %v272_v3 = vld [vmem:[%s1619_s15 + $0x180] sm:$0xff]  ;;  %v1857_v12 = vld [vmem:[#allocation5 + $0x188] sm:$0xff] }
  0x46   : > { %891 = vst [vmem:[%s1634_s17 + $0xd8] sm:$0xff] %v635_v29  ;;  %v1822_v29 = vld [vmem:[#allocation5 + $0x150] sm:$0xff] }
  0x47   : > { %892 = vst [vmem:[%s1634_s17 + $0xe0] sm:$0xff] %v636_v34  ;;  %v267_v34 = vld [vmem:[%s1619_s15 + $0x158] sm:$0xff]  ;;  %v650_v45 = vadd.f32 %v1822_v29, %v266_v26 }
  0x48   : > { %893 = vst [vmem:[%s1634_s17 + $0xe8] sm:$0xff] %v637_v39  ;;  %v649_v39 = vadd.f32 %v1817_v21, %v265_v20  ;;  %v274_v20 = vld [vmem:[%s1619_s15 + $0x190] sm:$0xff] }
  0x49   : > { %894 = vst [vmem:[%s1634_s17 + $0xf0] sm:$0xff] %v638_v43  ;;  %v1832_v43 = vld [vmem:[#allocation5 + $0x160] sm:$0xff] }
  0x4a   : > { %895 = vst [vmem:[%s1634_s17 + $0xf8] sm:$0xff] %v639_v48  ;;  %v269_v48 = vld [vmem:[%s1619_s15 + $0x168] sm:$0xff]  ;;  %v652_v58 = vadd.f32 %v1832_v43, %v268_v40  ;;  %v276_v40 = vld [vmem:[%s1619_s15 + $0x1a0] sm:$0xff] }
  0x4b   : > { %896 = vst [vmem:[%s1634_s17 + $0x100] sm:$0xff] %v640_v52  ;;  %v651_v52 = vadd.f32 %v1827_v36, %v267_v34  ;;  %v1867_v34 = vld [vmem:[#allocation5 + $0x198] sm:$0xff] }
  0x4c   : > { %897 = vst [vmem:[%s1634_s17 + $0x108] sm:$0xff] %v641_v57  ;;  %v1842_v57 = vld [vmem:[#allocation5 + $0x170] sm:$0xff] }
  0x4d   : > { %898 = vst [vmem:[%s1634_s17 + $0x110] sm:$0xff] %v642_v61  ;;  %v271_v61 = vld [vmem:[%s1619_s15 + $0x178] sm:$0xff]  ;;  %v654_v8 = vadd.f32 %v1842_v57, %v270_v54  ;;  %v1877_v54 = vld [vmem:[#allocation5 + $0x1a8] sm:$0xff] }
  0x4e   : > { %899 = vst [vmem:[%s1634_s17 + $0x118] sm:$0xff] %v643_v2  ;;  %v653_v2 = vadd.f32 %v1837_v49, %v269_v48 }
  0x4f   : > { %900 = vst [vmem:[%s1634_s17 + $0x120] sm:$0xff] %v644_v6  ;;  %v1852_v6 = vld [vmem:[#allocation5 + $0x180] sm:$0xff] }
  0x50   : > { %901 = vst [vmem:[%s1634_s17 + $0x128] sm:$0xff] %v645_v11  ;;  %v273_v11 = vld [vmem:[%s1619_s15 + $0x188] sm:$0xff]  ;;  %v656_v26 = vadd.f32 %v1852_v6, %v272_v3 }
  0x51   : > { %902 = vst [vmem:[%s1634_s17 + $0x130] sm:$0xff] %v646_v17  ;;  %v655_v17 = vadd.f32 %v1847_v63, %v271_v61  ;;  %v278_v61 = vld [vmem:[%s1619_s15 + $0x1b0] sm:$0xff] }
  0x52   : > { %903 = vst [vmem:[%s1634_s17 + $0x138] sm:$0xff] %v647_v25  ;;  %v1862_v25 = vld [vmem:[#allocation5 + $0x190] sm:$0xff] }
  0x53   : > { %904 = vst [vmem:[%s1634_s17 + $0x140] sm:$0xff] %v648_v31  ;;  %v275_v31 = vld [vmem:[%s1619_s15 + $0x198] sm:$0xff]  ;;  %v658_v48 = vadd.f32 %v1862_v25, %v274_v20 }
  0x54   : > { %905 = vst [vmem:[%s1634_s17 + $0x148] sm:$0xff] %v649_v39  ;;  %v657_v39 = vadd.f32 %v1857_v12, %v273_v11  ;;  %v1887_v11 = vld [vmem:[#allocation5 + $0x1b8] sm:$0xff] }
  0x55   : > { %906 = vst [vmem:[%s1634_s17 + $0x150] sm:$0xff] %v650_v45  ;;  %v1872_v45 = vld [vmem:[#allocation5 + $0x1a0] sm:$0xff] }
  0x56   : > { %907 = vst [vmem:[%s1634_s17 + $0x158] sm:$0xff] %v651_v52  ;;  %v277_v52 = vld [vmem:[%s1619_s15 + $0x1a8] sm:$0xff]  ;;  %v660_v3 = vadd.f32 %v1872_v45, %v276_v40 }
  0x57   : > { %2764 = vst [vmem:[#allocation11_spill] sm:$0xff] %v1862_v25  ;;  %v661_v20 = vadd.f32 %v1877_v54, %v277_v52  ;;  %v1892_v25 = vld [vmem:[#allocation5 + $0x1c0] sm:$0xff] }
  0x58   : > { %908 = vst [vmem:[%s1634_s17 + $0x160] sm:$0xff] %v652_v58  ;;  %v659_v58 = vadd.f32 %v1867_v34, %v275_v31 }
  0x59   : > { %2765 = vst [vmem:[#allocation12_spill] sm:$0xff] %v1867_v34  ;;  %v1897_v34 = vld [vmem:[#allocation5 + $0x1c8] sm:$0xff] }
  0x5a   : > { %909 = vst [vmem:[%s1634_s17 + $0x168] sm:$0xff] %v653_v2  ;;  %v1882_v2 = vld [vmem:[#allocation5 + $0x1b0] sm:$0xff] }
  0x5b   : > { %2766 = vst [vmem:[#allocation13_spill] sm:$0xff] %v1872_v45  ;;  %v662_v31 = vadd.f32 %v1882_v2, %v278_v61  ;;  %v1902_v45 = vld [vmem:[#allocation5 + $0x1d0] sm:$0xff] }
  0x5c   : > { %910 = vst [vmem:[%s1634_s17 + $0x170] sm:$0xff] %v654_v8  ;;  %v279_v8 = vld [vmem:[%s1619_s15 + $0x1b8] sm:$0xff] }
  0x5d   : > { %2767 = vst [vmem:[#allocation14_spill] sm:$0xff] %v1877_v54  ;;  %v663_v40 = vadd.f32 %v1887_v11, %v279_v8  ;;  %v1907_v54 = vld [vmem:[#allocation5 + $0x1d8] sm:$0xff] }
  0x5e   : > { %911 = vst [vmem:[%s1634_s17 + $0x178] sm:$0xff] %v655_v17  ;;  %v280_v17 = vld [vmem:[%s1619_s15 + $0x1c0] sm:$0xff] }
  0x5f   : > { %2768 = vst [vmem:[#allocation15_spill] sm:$0xff] %v1882_v2  ;;  %v664_v52 = vadd.f32 %v1892_v25, %v280_v17  ;;  %v1912_v2 = vld [vmem:[#allocation5 + $0x1e0] sm:$0xff] }
  0x60   : > { %912 = vst [vmem:[%s1634_s17 + $0x180] sm:$0xff] %v656_v26  ;;  %v281_v26 = vld [vmem:[%s1619_s15 + $0x1c8] sm:$0xff] }
  0x61   : > { %2769 = vst [vmem:[#allocation16_spill] sm:$0xff] %v1887_v11  ;;  %v665_v61 = vadd.f32 %v1897_v34, %v281_v26  ;;  %v1917_v11 = vld [vmem:[#allocation5 + $0x1e8] sm:$0xff] }
  0x62   : > { %913 = vst [vmem:[%s1634_s17 + $0x188] sm:$0xff] %v657_v39  ;;  %v282_v39 = vld [vmem:[%s1619_s15 + $0x1d0] sm:$0xff] }
  0x63   : > { %2770 = vst [vmem:[#allocation17_spill] sm:$0xff] %v1892_v25  ;;  %v666_v8 = vadd.f32 %v1902_v45, %v282_v39  ;;  %v1922_v25 = vld [vmem:[#allocation5 + $0x1f0] sm:$0xff] }
  0x64   : > { %914 = vst [vmem:[%s1634_s17 + $0x190] sm:$0xff] %v658_v48  ;;  %v283_v48 = vld [vmem:[%s1619_s15 + $0x1d8] sm:$0xff] }
  0x65   : > { %2771 = vst [vmem:[#allocation18_spill] sm:$0xff] %v1897_v34  ;;  %v667_v17 = vadd.f32 %v1907_v54, %v283_v48  ;;  %v1927_v34 = vld [vmem:[#allocation5 + $0x1f8] sm:$0xff] }
  0x66   : > { %915 = vst [vmem:[%s1634_s17 + $0x198] sm:$0xff] %v659_v58  ;;  %v284_v58 = vld [vmem:[%s1619_s15 + $0x1e0] sm:$0xff] }
  0x67   : > { %2772 = vst [vmem:[#allocation19_spill] sm:$0xff] %v1902_v45  ;;  %v668_v26 = vadd.f32 %v1912_v2, %v284_v58  ;;  %v1932_v45 = vld [vmem:[#allocation5 + $0x200] sm:$0xff] }
  0x68   : > { %916 = vst [vmem:[%s1634_s17 + $0x1a0] sm:$0xff] %v660_v3  ;;  %v285_v3 = vld [vmem:[%s1619_s15 + $0x1e8] sm:$0xff] }
  0x69   : > { %2773 = vst [vmem:[#allocation20_spill] sm:$0xff] %v1907_v54  ;;  %v669_v39 = vadd.f32 %v1917_v11, %v285_v3  ;;  %v1937_v54 = vld [vmem:[#allocation5 + $0x208] sm:$0xff] }
  0x6a   : > { %917 = vst [vmem:[%s1634_s17 + $0x1a8] sm:$0xff] %v661_v20  ;;  %v286_v20 = vld [vmem:[%s1619_s15 + $0x1f0] sm:$0xff] }
  0x6b   : > { %2774 = vst [vmem:[#allocation21_spill] sm:$0xff] %v1912_v2  ;;  %v670_v48 = vadd.f32 %v1922_v25, %v286_v20  ;;  %v1942_v2 = vld [vmem:[#allocation5 + $0x210] sm:$0xff] }
  0x6c   : > { %918 = vst [vmem:[%s1634_s17 + $0x1b0] sm:$0xff] %v662_v31  ;;  %v287_v31 = vld [vmem:[%s1619_s15 + $0x1f8] sm:$0xff] }
  0x6d   : > { %2775 = vst [vmem:[#allocation22_spill] sm:$0xff] %v1917_v11  ;;  %v671_v58 = vadd.f32 %v1927_v34, %v287_v31  ;;  %v1947_v11 = vld [vmem:[#allocation5 + $0x218] sm:$0xff] }
  0x6e   : > { %919 = vst [vmem:[%s1634_s17 + $0x1b8] sm:$0xff] %v663_v40  ;;  %v288_v40 = vld [vmem:[%s1619_s15 + $0x200] sm:$0xff] }
  0x6f   : > { %2776 = vst [vmem:[#allocation23_spill] sm:$0xff] %v1922_v25  ;;  %v672_v3 = vadd.f32 %v1932_v45, %v288_v40  ;;  %v1952_v25 = vld [vmem:[#allocation5 + $0x220] sm:$0xff] }
  0x70   : > { %920 = vst [vmem:[%s1634_s17 + $0x1c0] sm:$0xff] %v664_v52  ;;  %v289_v52 = vld [vmem:[%s1619_s15 + $0x208] sm:$0xff] }
  0x71   : > { %2777 = vst [vmem:[#allocation24_spill] sm:$0xff] %v1927_v34  ;;  %v673_v20 = vadd.f32 %v1937_v54, %v289_v52  ;;  %v1957_v34 = vld [vmem:[#allocation5 + $0x228] sm:$0xff] }
  0x72   : > { %921 = vst [vmem:[%s1634_s17 + $0x1c8] sm:$0xff] %v665_v61  ;;  %v290_v61 = vld [vmem:[%s1619_s15 + $0x210] sm:$0xff] }
  0x73   : > { %2778 = vst [vmem:[#allocation25_spill] sm:$0xff] %v1932_v45  ;;  %v674_v31 = vadd.f32 %v1942_v2, %v290_v61  ;;  %v1962_v45 = vld [vmem:[#allocation5 + $0x230] sm:$0xff] }
  0x74   : > { %922 = vst [vmem:[%s1634_s17 + $0x1d0] sm:$0xff] %v666_v8  ;;  %v291_v8 = vld [vmem:[%s1619_s15 + $0x218] sm:$0xff] }
  0x75   : > { %2779 = vst [vmem:[#allocation26_spill] sm:$0xff] %v1937_v54  ;;  %v675_v40 = vadd.f32 %v1947_v11, %v291_v8  ;;  %v1967_v54 = vld [vmem:[#allocation5 + $0x238] sm:$0xff] }
  0x76   : > { %923 = vst [vmem:[%s1634_s17 + $0x1d8] sm:$0xff] %v667_v17  ;;  %v292_v17 = vld [vmem:[%s1619_s15 + $0x220] sm:$0xff] }
  0x77   : > { %2780 = vst [vmem:[#allocation27_spill] sm:$0xff] %v1942_v2  ;;  %v676_v52 = vadd.f32 %v1952_v25, %v292_v17  ;;  %v1972_v2 = vld [vmem:[#allocation5 + $0x240] sm:$0xff] }
  0x78   : > { %924 = vst [vmem:[%s1634_s17 + $0x1e0] sm:$0xff] %v668_v26  ;;  %v293_v26 = vld [vmem:[%s1619_s15 + $0x228] sm:$0xff] }
  0x79   : > { %2781 = vst [vmem:[#allocation28_spill] sm:$0xff] %v1947_v11  ;;  %v677_v61 = vadd.f32 %v1957_v34, %v293_v26  ;;  %v1977_v11 = vld [vmem:[#allocation5 + $0x248] sm:$0xff] }
  0x7a   : > { %925 = vst [vmem:[%s1634_s17 + $0x1e8] sm:$0xff] %v669_v39  ;;  %v294_v39 = vld [vmem:[%s1619_s15 + $0x230] sm:$0xff] }
  0x7b   : > { %2782 = vst [vmem:[#allocation29_spill] sm:$0xff] %v1952_v25  ;;  %v678_v8 = vadd.f32 %v1962_v45, %v294_v39  ;;  %v1982_v25 = vld [vmem:[#allocation5 + $0x250] sm:$0xff] }
  0x7c   : > { %926 = vst [vmem:[%s1634_s17 + $0x1f0] sm:$0xff] %v670_v48  ;;  %v295_v48 = vld [vmem:[%s1619_s15 + $0x238] sm:$0xff] }
  0x7d   : > { %2783 = vst [vmem:[#allocation30_spill] sm:$0xff] %v1957_v34  ;;  %v679_v17 = vadd.f32 %v1967_v54, %v295_v48  ;;  %v1987_v34 = vld [vmem:[#allocation5 + $0x258] sm:$0xff] }
  0x7e   : > { %927 = vst [vmem:[%s1634_s17 + $0x1f8] sm:$0xff] %v671_v58  ;;  %v296_v58 = vld [vmem:[%s1619_s15 + $0x240] sm:$0xff] }
  0x7f   : > { %2784 = vst [vmem:[#allocation31_spill] sm:$0xff] %v1962_v45  ;;  %v680_v26 = vadd.f32 %v1972_v2, %v296_v58  ;;  %v1992_v45 = vld [vmem:[#allocation5 + $0x260] sm:$0xff] }
  0x80   : > { %928 = vst [vmem:[%s1634_s17 + $0x200] sm:$0xff] %v672_v3  ;;  %v297_v3 = vld [vmem:[%s1619_s15 + $0x248] sm:$0xff] }
  0x81   : > { %2785 = vst [vmem:[#allocation32_spill] sm:$0xff] %v1967_v54  ;;  %v681_v39 = vadd.f32 %v1977_v11, %v297_v3  ;;  %v1997_v54 = vld [vmem:[#allocation5 + $0x268] sm:$0xff] }
  0x82   : > { %929 = vst [vmem:[%s1634_s17 + $0x208] sm:$0xff] %v673_v20  ;;  %v298_v20 = vld [vmem:[%s1619_s15 + $0x250] sm:$0xff] }
  0x83   : > { %2786 = vst [vmem:[#allocation33_spill] sm:$0xff] %v1972_v2  ;;  %v682_v48 = vadd.f32 %v1982_v25, %v298_v20  ;;  %v2002_v2 = vld [vmem:[#allocation5 + $0x270] sm:$0xff] }
  0x84   : > { %930 = vst [vmem:[%s1634_s17 + $0x210] sm:$0xff] %v674_v31  ;;  %v299_v31 = vld [vmem:[%s1619_s15 + $0x258] sm:$0xff] }
  0x85   : > { %2787 = vst [vmem:[#allocation34_spill] sm:$0xff] %v1977_v11  ;;  %v683_v58 = vadd.f32 %v1987_v34, %v299_v31  ;;  %v2007_v11 = vld [vmem:[#allocation5 + $0x278] sm:$0xff] }
  0x86   : > { %931 = vst [vmem:[%s1634_s17 + $0x218] sm:$0xff] %v675_v40  ;;  %v300_v40 = vld [vmem:[%s1619_s15 + $0x260] sm:$0xff] }
  0x87   : > { %2788 = vst [vmem:[#allocation35_spill] sm:$0xff] %v1982_v25  ;;  %v684_v3 = vadd.f32 %v1992_v45, %v300_v40  ;;  %v2012_v25 = vld [vmem:[#allocation5 + $0x280] sm:$0xff] }
  0x88   : > { %932 = vst [vmem:[%s1634_s17 + $0x220] sm:$0xff] %v676_v52  ;;  %v301_v52 = vld [vmem:[%s1619_s15 + $0x268] sm:$0xff] }
  0x89   : > { %2789 = vst [vmem:[#allocation36_spill] sm:$0xff] %v1987_v34  ;;  %v685_v20 = vadd.f32 %v1997_v54, %v301_v52  ;;  %v2017_v34 = vld [vmem:[#allocation5 + $0x288] sm:$0xff] }
  0x8a   : > { %933 = vst [vmem:[%s1634_s17 + $0x228] sm:$0xff] %v677_v61  ;;  %v302_v61 = vld [vmem:[%s1619_s15 + $0x270] sm:$0xff] }
  0x8b   : > { %2790 = vst [vmem:[#allocation37_spill] sm:$0xff] %v1992_v45  ;;  %v686_v31 = vadd.f32 %v2002_v2, %v302_v61  ;;  %v2022_v45 = vld [vmem:[#allocation5 + $0x290] sm:$0xff] }
  0x8c   : > { %934 = vst [vmem:[%s1634_s17 + $0x230] sm:$0xff] %v678_v8  ;;  %v303_v8 = vld [vmem:[%s1619_s15 + $0x278] sm:$0xff] }
  0x8d   : > { %2791 = vst [vmem:[#allocation38_spill] sm:$0xff] %v1997_v54  ;;  %v687_v40 = vadd.f32 %v2007_v11, %v303_v8  ;;  %v2027_v54 = vld [vmem:[#allocation5 + $0x298] sm:$0xff] }
  0x8e   : > { %935 = vst [vmem:[%s1634_s17 + $0x238] sm:$0xff] %v679_v17  ;;  %v304_v17 = vld [vmem:[%s1619_s15 + $0x280] sm:$0xff] }
  0x8f   : > { %2792 = vst [vmem:[#allocation39_spill] sm:$0xff] %v2002_v2  ;;  %v688_v52 = vadd.f32 %v2012_v25, %v304_v17  ;;  %v2032_v2 = vld [vmem:[#allocation5 + $0x2a0] sm:$0xff] }
  0x90   : > { %936 = vst [vmem:[%s1634_s17 + $0x240] sm:$0xff] %v680_v26  ;;  %v305_v26 = vld [vmem:[%s1619_s15 + $0x288] sm:$0xff] }
  0x91   : > { %2793 = vst [vmem:[#allocation40_spill] sm:$0xff] %v2007_v11  ;;  %v689_v61 = vadd.f32 %v2017_v34, %v305_v26  ;;  %v2037_v11 = vld [vmem:[#allocation5 + $0x2a8] sm:$0xff] }
  0x92   : > { %937 = vst [vmem:[%s1634_s17 + $0x248] sm:$0xff] %v681_v39  ;;  %v306_v39 = vld [vmem:[%s1619_s15 + $0x290] sm:$0xff] }
  0x93   : > { %2794 = vst [vmem:[#allocation41_spill] sm:$0xff] %v2012_v25  ;;  %v690_v8 = vadd.f32 %v2022_v45, %v306_v39  ;;  %v2042_v25 = vld [vmem:[#allocation5 + $0x2b0] sm:$0xff] }
  0x94   : > { %938 = vst [vmem:[%s1634_s17 + $0x250] sm:$0xff] %v682_v48  ;;  %v307_v48 = vld [vmem:[%s1619_s15 + $0x298] sm:$0xff] }
  0x95   : > { %2795 = vst [vmem:[#allocation42_spill] sm:$0xff] %v2017_v34  ;;  %v691_v17 = vadd.f32 %v2027_v54, %v307_v48  ;;  %v2047_v34 = vld [vmem:[#allocation5 + $0x2b8] sm:$0xff] }
  0x96   : > { %939 = vst [vmem:[%s1634_s17 + $0x258] sm:$0xff] %v683_v58  ;;  %v308_v58 = vld [vmem:[%s1619_s15 + $0x2a0] sm:$0xff] }
  0x97   : > { %2796 = vst [vmem:[#allocation43_spill] sm:$0xff] %v2022_v45  ;;  %v692_v26 = vadd.f32 %v2032_v2, %v308_v58  ;;  %v2052_v45 = vld [vmem:[#allocation5 + $0x2c0] sm:$0xff] }
  0x98   : > { %940 = vst [vmem:[%s1634_s17 + $0x260] sm:$0xff] %v684_v3  ;;  %v309_v3 = vld [vmem:[%s1619_s15 + $0x2a8] sm:$0xff] }
  0x99   : > { %2797 = vst [vmem:[#allocation44_spill] sm:$0xff] %v2027_v54  ;;  %v693_v39 = vadd.f32 %v2037_v11, %v309_v3  ;;  %v2057_v54 = vld [vmem:[#allocation5 + $0x2c8] sm:$0xff] }
  0x9a   : > { %941 = vst [vmem:[%s1634_s17 + $0x268] sm:$0xff] %v685_v20  ;;  %v310_v20 = vld [vmem:[%s1619_s15 + $0x2b0] sm:$0xff] }
  0x9b   : > { %2798 = vst [vmem:[#allocation45_spill] sm:$0xff] %v2032_v2  ;;  %v694_v48 = vadd.f32 %v2042_v25, %v310_v20  ;;  %v2062_v2 = vld [vmem:[#allocation5 + $0x2d0] sm:$0xff] }
  0x9c   : > { %942 = vst [vmem:[%s1634_s17 + $0x270] sm:$0xff] %v686_v31  ;;  %v311_v31 = vld [vmem:[%s1619_s15 + $0x2b8] sm:$0xff] }
  0x9d   : > { %2799 = vst [vmem:[#allocation46_spill] sm:$0xff] %v2037_v11  ;;  %v695_v58 = vadd.f32 %v2047_v34, %v311_v31  ;;  %v2067_v11 = vld [vmem:[#allocation5 + $0x2d8] sm:$0xff] }
  0x9e   : > { %943 = vst [vmem:[%s1634_s17 + $0x278] sm:$0xff] %v687_v40  ;;  %v312_v40 = vld [vmem:[%s1619_s15 + $0x2c0] sm:$0xff] }
  0x9f   : > { %2800 = vst [vmem:[#allocation47_spill] sm:$0xff] %v2042_v25  ;;  %v696_v3 = vadd.f32 %v2052_v45, %v312_v40  ;;  %v2072_v25 = vld [vmem:[#allocation5 + $0x2e0] sm:$0xff] }
  0xa0   : > { %944 = vst [vmem:[%s1634_s17 + $0x280] sm:$0xff] %v688_v52  ;;  %v313_v52 = vld [vmem:[%s1619_s15 + $0x2c8] sm:$0xff] }
  0xa1   : > { %2801 = vst [vmem:[#allocation48_spill] sm:$0xff] %v2047_v34  ;;  %v697_v20 = vadd.f32 %v2057_v54, %v313_v52  ;;  %v2077_v34 = vld [vmem:[#allocation5 + $0x2e8] sm:$0xff] }
  0xa2   : > { %945 = vst [vmem:[%s1634_s17 + $0x288] sm:$0xff] %v689_v61  ;;  %v314_v61 = vld [vmem:[%s1619_s15 + $0x2d0] sm:$0xff] }
  0xa3   : > { %2802 = vst [vmem:[#allocation49_spill] sm:$0xff] %v2052_v45  ;;  %v698_v31 = vadd.f32 %v2062_v2, %v314_v61  ;;  %v2082_v45 = vld [vmem:[#allocation5 + $0x2f0] sm:$0xff] }
  0xa4   : > { %946 = vst [vmem:[%s1634_s17 + $0x290] sm:$0xff] %v690_v8  ;;  %v315_v8 = vld [vmem:[%s1619_s15 + $0x2d8] sm:$0xff] }
  0xa5   : > { %2803 = vst [vmem:[#allocation50_spill] sm:$0xff] %v2057_v54  ;;  %v699_v40 = vadd.f32 %v2067_v11, %v315_v8  ;;  %v2087_v54 = vld [vmem:[#allocation5 + $0x2f8] sm:$0xff] }
  0xa6   : > { %947 = vst [vmem:[%s1634_s17 + $0x298] sm:$0xff] %v691_v17  ;;  %v316_v17 = vld [vmem:[%s1619_s15 + $0x2e0] sm:$0xff] }
  0xa7   : > { %2804 = vst [vmem:[#allocation51_spill] sm:$0xff] %v2062_v2  ;;  %v700_v52 = vadd.f32 %v2072_v25, %v316_v17  ;;  %v2092_v2 = vld [vmem:[#allocation5 + $0x300] sm:$0xff] }
  0xa8   : > { %948 = vst [vmem:[%s1634_s17 + $0x2a0] sm:$0xff] %v692_v26  ;;  %v317_v26 = vld [vmem:[%s1619_s15 + $0x2e8] sm:$0xff] }
  0xa9   : > { %2805 = vst [vmem:[#allocation52_spill] sm:$0xff] %v2067_v11  ;;  %v701_v61 = vadd.f32 %v2077_v34, %v317_v26  ;;  %v2097_v11 = vld [vmem:[#allocation5 + $0x308] sm:$0xff] }
  0xaa   : > { %949 = vst [vmem:[%s1634_s17 + $0x2a8] sm:$0xff] %v693_v39  ;;  %v318_v39 = vld [vmem:[%s1619_s15 + $0x2f0] sm:$0xff] }
  0xab   : > { %2806 = vst [vmem:[#allocation53_spill] sm:$0xff] %v2072_v25  ;;  %v702_v8 = vadd.f32 %v2082_v45, %v318_v39  ;;  %v2102_v25 = vld [vmem:[#allocation5 + $0x310] sm:$0xff] }
  0xac   : > { %950 = vst [vmem:[%s1634_s17 + $0x2b0] sm:$0xff] %v694_v48  ;;  %v319_v48 = vld [vmem:[%s1619_s15 + $0x2f8] sm:$0xff] }
  0xad   : > { %2807 = vst [vmem:[#allocation54_spill] sm:$0xff] %v2077_v34  ;;  %v703_v17 = vadd.f32 %v2087_v54, %v319_v48  ;;  %v2107_v34 = vld [vmem:[#allocation5 + $0x318] sm:$0xff] }
  0xae   : > { %951 = vst [vmem:[%s1634_s17 + $0x2b8] sm:$0xff] %v695_v58  ;;  %v320_v58 = vld [vmem:[%s1619_s15 + $0x300] sm:$0xff] }
  0xaf   : > { %2808 = vst [vmem:[#allocation55_spill] sm:$0xff] %v2082_v45  ;;  %v704_v26 = vadd.f32 %v2092_v2, %v320_v58  ;;  %v2112_v45 = vld [vmem:[#allocation5 + $0x320] sm:$0xff] }
  0xb0   : > { %952 = vst [vmem:[%s1634_s17 + $0x2c0] sm:$0xff] %v696_v3  ;;  %v321_v3 = vld [vmem:[%s1619_s15 + $0x308] sm:$0xff] }
  0xb1   : > { %2809 = vst [vmem:[#allocation56_spill] sm:$0xff] %v2087_v54  ;;  %v705_v39 = vadd.f32 %v2097_v11, %v321_v3  ;;  %v2117_v54 = vld [vmem:[#allocation5 + $0x328] sm:$0xff] }
  0xb2   : > { %953 = vst [vmem:[%s1634_s17 + $0x2c8] sm:$0xff] %v697_v20  ;;  %v322_v20 = vld [vmem:[%s1619_s15 + $0x310] sm:$0xff] }
  0xb3   : > { %2810 = vst [vmem:[#allocation57_spill] sm:$0xff] %v2092_v2  ;;  %v706_v48 = vadd.f32 %v2102_v25, %v322_v20  ;;  %v2122_v2 = vld [vmem:[#allocation5 + $0x330] sm:$0xff] }
  0xb4   : > { %954 = vst [vmem:[%s1634_s17 + $0x2d0] sm:$0xff] %v698_v31  ;;  %v323_v31 = vld [vmem:[%s1619_s15 + $0x318] sm:$0xff] }
  0xb5   : > { %2811 = vst [vmem:[#allocation58_spill] sm:$0xff] %v2097_v11  ;;  %v707_v58 = vadd.f32 %v2107_v34, %v323_v31  ;;  %v2127_v11 = vld [vmem:[#allocation5 + $0x338] sm:$0xff] }
  0xb6   : > { %955 = vst [vmem:[%s1634_s17 + $0x2d8] sm:$0xff] %v699_v40  ;;  %v324_v40 = vld [vmem:[%s1619_s15 + $0x320] sm:$0xff] }
  0xb7   : > { %2812 = vst [vmem:[#allocation59_spill] sm:$0xff] %v2102_v25  ;;  %v708_v3 = vadd.f32 %v2112_v45, %v324_v40  ;;  %v2132_v25 = vld [vmem:[#allocation5 + $0x340] sm:$0xff] }
  0xb8   : > { %956 = vst [vmem:[%s1634_s17 + $0x2e0] sm:$0xff] %v700_v52  ;;  %v325_v52 = vld [vmem:[%s1619_s15 + $0x328] sm:$0xff] }
  0xb9   : > { %2813 = vst [vmem:[#allocation60_spill] sm:$0xff] %v2107_v34  ;;  %v709_v20 = vadd.f32 %v2117_v54, %v325_v52  ;;  %v2137_v34 = vld [vmem:[#allocation5 + $0x348] sm:$0xff] }
  0xba   : > { %957 = vst [vmem:[%s1634_s17 + $0x2e8] sm:$0xff] %v701_v61  ;;  %v326_v61 = vld [vmem:[%s1619_s15 + $0x330] sm:$0xff] }
  0xbb   : > { %2814 = vst [vmem:[#allocation61_spill] sm:$0xff] %v2112_v45  ;;  %v710_v31 = vadd.f32 %v2122_v2, %v326_v61  ;;  %v2142_v45 = vld [vmem:[#allocation5 + $0x350] sm:$0xff] }
  0xbc   : > { %958 = vst [vmem:[%s1634_s17 + $0x2f0] sm:$0xff] %v702_v8  ;;  %v327_v8 = vld [vmem:[%s1619_s15 + $0x338] sm:$0xff] }
  0xbd   : > { %2815 = vst [vmem:[#allocation62_spill] sm:$0xff] %v2117_v54  ;;  %v711_v40 = vadd.f32 %v2127_v11, %v327_v8  ;;  %v2147_v54 = vld [vmem:[#allocation5 + $0x358] sm:$0xff] }
  0xbe   : > { %959 = vst [vmem:[%s1634_s17 + $0x2f8] sm:$0xff] %v703_v17  ;;  %v328_v17 = vld [vmem:[%s1619_s15 + $0x340] sm:$0xff] }
  0xbf   : > { %2816 = vst [vmem:[#allocation63_spill] sm:$0xff] %v2122_v2  ;;  %v712_v52 = vadd.f32 %v2132_v25, %v328_v17  ;;  %v2152_v2 = vld [vmem:[#allocation5 + $0x360] sm:$0xff] }
  0xc0   : > { %960 = vst [vmem:[%s1634_s17 + $0x300] sm:$0xff] %v704_v26  ;;  %v329_v26 = vld [vmem:[%s1619_s15 + $0x348] sm:$0xff] }
  0xc1   : > { %2817 = vst [vmem:[#allocation64_spill] sm:$0xff] %v2127_v11  ;;  %v713_v61 = vadd.f32 %v2137_v34, %v329_v26  ;;  %v2157_v11 = vld [vmem:[#allocation5 + $0x368] sm:$0xff] }
  0xc2   : > { %961 = vst [vmem:[%s1634_s17 + $0x308] sm:$0xff] %v705_v39  ;;  %v330_v39 = vld [vmem:[%s1619_s15 + $0x350] sm:$0xff] }
  0xc3   : > { %2818 = vst [vmem:[#allocation65_spill] sm:$0xff] %v2132_v25  ;;  %v714_v8 = vadd.f32 %v2142_v45, %v330_v39  ;;  %v2162_v25 = vld [vmem:[#allocation5 + $0x370] sm:$0xff] }
  0xc4   : > { %962 = vst [vmem:[%s1634_s17 + $0x310] sm:$0xff] %v706_v48  ;;  %v331_v48 = vld [vmem:[%s1619_s15 + $0x358] sm:$0xff] }
  0xc5   : > { %2819 = vst [vmem:[#allocation66_spill] sm:$0xff] %v2137_v34  ;;  %v715_v17 = vadd.f32 %v2147_v54, %v331_v48  ;;  %v2167_v34 = vld [vmem:[#allocation5 + $0x378] sm:$0xff] }
  0xc6   : > { %963 = vst [vmem:[%s1634_s17 + $0x318] sm:$0xff] %v707_v58  ;;  %v332_v58 = vld [vmem:[%s1619_s15 + $0x360] sm:$0xff] }
  0xc7   : > { %2820 = vst [vmem:[#allocation67_spill] sm:$0xff] %v2142_v45  ;;  %v716_v26 = vadd.f32 %v2152_v2, %v332_v58  ;;  %v2172_v45 = vld [vmem:[#allocation5 + $0x380] sm:$0xff] }
  0xc8   : > { %964 = vst [vmem:[%s1634_s17 + $0x320] sm:$0xff] %v708_v3  ;;  %v333_v3 = vld [vmem:[%s1619_s15 + $0x368] sm:$0xff] }
  0xc9   : > { %2821 = vst [vmem:[#allocation68_spill] sm:$0xff] %v2147_v54  ;;  %v717_v39 = vadd.f32 %v2157_v11, %v333_v3  ;;  %v2177_v54 = vld [vmem:[#allocation5 + $0x388] sm:$0xff] }
  0xca   : > { %965 = vst [vmem:[%s1634_s17 + $0x328] sm:$0xff] %v709_v20  ;;  %v334_v20 = vld [vmem:[%s1619_s15 + $0x370] sm:$0xff] }
  0xcb   : > { %2822 = vst [vmem:[#allocation69_spill] sm:$0xff] %v2152_v2  ;;  %v718_v48 = vadd.f32 %v2162_v25, %v334_v20  ;;  %v2182_v2 = vld [vmem:[#allocation5 + $0x390] sm:$0xff] }
  0xcc   : > { %966 = vst [vmem:[%s1634_s17 + $0x330] sm:$0xff] %v710_v31  ;;  %v335_v31 = vld [vmem:[%s1619_s15 + $0x378] sm:$0xff] }
  0xcd   : > { %2823 = vst [vmem:[#allocation70_spill] sm:$0xff] %v2157_v11  ;;  %v719_v58 = vadd.f32 %v2167_v34, %v335_v31  ;;  %v2187_v11 = vld [vmem:[#allocation5 + $0x398] sm:$0xff] }
  0xce   : > { %967 = vst [vmem:[%s1634_s17 + $0x338] sm:$0xff] %v711_v40  ;;  %v336_v40 = vld [vmem:[%s1619_s15 + $0x380] sm:$0xff] }
  0xcf   : > { %2824 = vst [vmem:[#allocation71_spill] sm:$0xff] %v2162_v25  ;;  %v720_v3 = vadd.f32 %v2172_v45, %v336_v40  ;;  %v2192_v25 = vld [vmem:[#allocation5 + $0x3a0] sm:$0xff] }
  0xd0   : > { %968 = vst [vmem:[%s1634_s17 + $0x340] sm:$0xff] %v712_v52  ;;  %v337_v52 = vld [vmem:[%s1619_s15 + $0x388] sm:$0xff] }
  0xd1   : > { %2825 = vst [vmem:[#allocation72_spill] sm:$0xff] %v2167_v34  ;;  %v721_v20 = vadd.f32 %v2177_v54, %v337_v52  ;;  %v2197_v34 = vld [vmem:[#allocation5 + $0x3a8] sm:$0xff] }
  0xd2   : > { %969 = vst [vmem:[%s1634_s17 + $0x348] sm:$0xff] %v713_v61  ;;  %v338_v61 = vld [vmem:[%s1619_s15 + $0x390] sm:$0xff] }
  0xd3   : > { %2826 = vst [vmem:[#allocation73_spill] sm:$0xff] %v2172_v45  ;;  %v722_v31 = vadd.f32 %v2182_v2, %v338_v61  ;;  %v2202_v45 = vld [vmem:[#allocation5 + $0x3b0] sm:$0xff] }
  0xd4   : > { %970 = vst [vmem:[%s1634_s17 + $0x350] sm:$0xff] %v714_v8  ;;  %v339_v8 = vld [vmem:[%s1619_s15 + $0x398] sm:$0xff] }
  0xd5   : > { %2827 = vst [vmem:[#allocation74_spill] sm:$0xff] %v2177_v54  ;;  %v723_v40 = vadd.f32 %v2187_v11, %v339_v8  ;;  %v2207_v54 = vld [vmem:[#allocation5 + $0x3b8] sm:$0xff] }
  0xd6   : > { %971 = vst [vmem:[%s1634_s17 + $0x358] sm:$0xff] %v715_v17  ;;  %v340_v17 = vld [vmem:[%s1619_s15 + $0x3a0] sm:$0xff] }
  0xd7   : > { %2828 = vst [vmem:[#allocation75_spill] sm:$0xff] %v2182_v2  ;;  %v724_v52 = vadd.f32 %v2192_v25, %v340_v17  ;;  %v2212_v2 = vld [vmem:[#allocation5 + $0x3c0] sm:$0xff] }
  0xd8   : > { %972 = vst [vmem:[%s1634_s17 + $0x360] sm:$0xff] %v716_v26  ;;  %v341_v26 = vld [vmem:[%s1619_s15 + $0x3a8] sm:$0xff] }
  0xd9   : > { %2829 = vst [vmem:[#allocation76_spill] sm:$0xff] %v2187_v11  ;;  %v725_v61 = vadd.f32 %v2197_v34, %v341_v26  ;;  %v2217_v11 = vld [vmem:[#allocation5 + $0x3c8] sm:$0xff] }
  0xda   : > { %973 = vst [vmem:[%s1634_s17 + $0x368] sm:$0xff] %v717_v39  ;;  %v342_v39 = vld [vmem:[%s1619_s15 + $0x3b0] sm:$0xff] }
  0xdb   : > { %2830 = vst [vmem:[#allocation77_spill] sm:$0xff] %v2192_v25  ;;  %v726_v8 = vadd.f32 %v2202_v45, %v342_v39  ;;  %v2222_v25 = vld [vmem:[#allocation5 + $0x3d0] sm:$0xff] }
  0xdc   : > { %974 = vst [vmem:[%s1634_s17 + $0x370] sm:$0xff] %v718_v48  ;;  %v343_v48 = vld [vmem:[%s1619_s15 + $0x3b8] sm:$0xff] }
  0xdd   : > { %2831 = vst [vmem:[#allocation78_spill] sm:$0xff] %v2197_v34  ;;  %v727_v17 = vadd.f32 %v2207_v54, %v343_v48  ;;  %v2227_v34 = vld [vmem:[#allocation5 + $0x3d8] sm:$0xff] }
  0xde   : > { %975 = vst [vmem:[%s1634_s17 + $0x378] sm:$0xff] %v719_v58  ;;  %v344_v58 = vld [vmem:[%s1619_s15 + $0x3c0] sm:$0xff] }
  0xdf   : > { %2832 = vst [vmem:[#allocation79_spill] sm:$0xff] %v2202_v45  ;;  %v728_v26 = vadd.f32 %v2212_v2, %v344_v58  ;;  %v2232_v45 = vld [vmem:[#allocation5 + $0x3e0] sm:$0xff]  ;;  %v2237_v58 = vld [vmem:[#allocation5 + $0x3e8] sm:$0xff] }
  0xe0   : > { %976 = vst [vmem:[%s1634_s17 + $0x380] sm:$0xff] %v720_v3  ;;  %v345_v3 = vld [vmem:[%s1619_s15 + $0x3c8] sm:$0xff] }
  0xe1   : > { %2833 = vst [vmem:[#allocation80_spill] sm:$0xff] %v2207_v54  ;;  %v729_v39 = vadd.f32 %v2217_v11, %v345_v3  ;;  %v2242_v3 = vld [vmem:[#allocation5 + $0x3f0] sm:$0xff]  ;;  %v355_v54 = vld [vmem:[%s1619_s15 + $0x418] sm:$0xff] }
  0xe2   : > { %977 = vst [vmem:[%s1634_s17 + $0x388] sm:$0xff] %v721_v20  ;;  %v346_v20 = vld [vmem:[%s1619_s15 + $0x3d0] sm:$0xff] }
  0xe3   : > { %2834 = vst [vmem:[#allocation81_spill] sm:$0xff] %v2212_v2  ;;  %v730_v48 = vadd.f32 %v2222_v25, %v346_v20  ;;  %v350_v2 = vld [vmem:[%s1619_s15 + $0x3f0] sm:$0xff]  ;;  %v2247_v20 = vld [vmem:[#allocation5 + $0x3f8] sm:$0xff] }
  0xe4   : > { %978 = vst [vmem:[%s1634_s17 + $0x390] sm:$0xff] %v722_v31  ;;  %v347_v31 = vld [vmem:[%s1619_s15 + $0x3d8] sm:$0xff] }
  0xe5   : > { %2835 = vst [vmem:[#allocation82_spill] sm:$0xff] %v2217_v11 }
  0xe6   : > { %979 = vst [vmem:[%s1634_s17 + $0x398] sm:$0xff] %v723_v40  ;;  %v348_v40 = vld [vmem:[%s1619_s15 + $0x3e0] sm:$0xff] }
  0xe7   : > { %2836 = vst [vmem:[#allocation83_spill] sm:$0xff] %v2222_v25  ;;  %v732_v11 = vadd.f32 %v2232_v45, %v348_v40  ;;  %v354_v40 = vld [vmem:[%s1619_s15 + $0x410] sm:$0xff] }
  0xe8   : > { %980 = vst [vmem:[%s1634_s17 + $0x3a0] sm:$0xff] %v724_v52  ;;  %v349_v52 = vld [vmem:[%s1619_s15 + $0x3e8] sm:$0xff] }
  0xe9   : > { %2837 = vst [vmem:[#allocation84_spill] sm:$0xff] %v2227_v34  ;;  %v733_v25 = vadd.f32 %v2237_v58, %v349_v52  ;;  %v1339_v52 = vld [vmem:[#allocation5 + $0x8] sm:$0xff] }
  0xea   : > { %981 = vst [vmem:[%s1634_s17 + $0x3a8] sm:$0xff] %v725_v61  ;;  %v731_v61 = vadd.f32 %v2227_v34, %v347_v31  ;;  %v734_v31 = vadd.f32 %v2242_v3, %v350_v2  ;;  %v353_v34 = vld [vmem:[%s1619_s15 + $0x408] sm:$0xff]  ;;  %v356_v2 = vld [vmem:[%s1619_s15 + $0x420] sm:$0xff] }
  0xeb   : > { %2838 = vst [vmem:[#allocation85_spill] sm:$0xff] %v2232_v45  ;;  %v1338_v45 = vld [vmem:[#allocation5] sm:$0xff] }
  0xec   : > { %982 = vst [vmem:[%s1634_s17 + $0x3b0] sm:$0xff] %v726_v8  ;;  %v351_v8 = vld [vmem:[%s1619_s15 + $0x3f8] sm:$0xff] }
  0xed   : > { %983 = vst [vmem:[%s1634_s17 + $0x3b8] sm:$0xff] %v727_v17  ;;  %v352_v17 = vld [vmem:[%s1619_s15 + $0x400] sm:$0xff] }
  0xee   : > { %984 = vst [vmem:[%s1634_s17 + $0x3c0] sm:$0xff] %v728_v26  ;;  %v735_v26 = vadd.f32 %v2247_v20, %v351_v8 }
  0xef   : > { %2839 = vst [vmem:[#allocation86_spill] sm:$0xff] %v2247_v20  ;;  %v357_v20 = vld [vmem:[%s1619_s15 + $0x428] sm:$0xff] }
  0xf0   : > { %985 = vst [vmem:[%s1634_s17 + $0x3c8] sm:$0xff] %v729_v39  ;;  %v736_v39 = vadd.f32 %v1338_v45, %v352_v17  ;;  %v358_v17 = vld [vmem:[%s1619_s15 + $0x430] sm:$0xff] }
  0xf1   : > { %986 = vst [vmem:[%s1634_s17 + $0x3d0] sm:$0xff] %v730_v48  ;;  %v737_v48 = vadd.f32 %v1339_v52, %v353_v34  ;;  %v359_v34 = vld [vmem:[%s1619_s15 + $0x438] sm:$0xff] }
  0xf2   : > { %987 = vst [vmem:[%s1634_s17 + $0x3d8] sm:$0xff] %v731_v61  ;;  %v1340_v61 = vld [vmem:[#allocation5 + $0x10] sm:$0xff] }
  0xf3   : > { %988 = vst [vmem:[%s1634_s17 + $0x3e0] sm:$0xff] %v732_v11  ;;  %v738_v8 = vadd.f32 %v1340_v61, %v354_v40  ;;  %v1341_v11 = vld [vmem:[#allocation5 + $0x18] sm:$0xff]  ;;  %v360_v40 = vld [vmem:[%s1619_s15 + $0x440] sm:$0xff] }
  0xf4   : > { %989 = vst [vmem:[%s1634_s17 + $0x3e8] sm:$0xff] %v733_v25  ;;  %v739_v45 = vadd.f32 %v1341_v11, %v355_v54  ;;  %v740_v25 = vadd.f32 %v1637_v13, %v356_v2  ;;  %v361_v54 = vld [vmem:[%s1619_s15 + $0x448] sm:$0xff]  ;;  %v362_v13 = vld [vmem:[%s1619_s15 + $0x450] sm:$0xff]  ;;  %v744_v52 = vadd.f32 %v1654_v24, %v360_v40 }
  0xf5   : > { %990 = vst [vmem:[%s1634_s17 + $0x3f0] sm:$0xff] %v734_v31  ;;  %v741_v31 = vadd.f32 %v1640_v15, %v357_v20  ;;  %v363_v15 = vld [vmem:[%s1619_s15 + $0x458] sm:$0xff]  ;;  %v745_v20 = vadd.f32 %v1659_v27, %v361_v54  ;;  %v366_v24 = vld [vmem:[%s1619_s15 + $0x470] sm:$0xff] }
  0xf6   : > { %991 = vst [vmem:[%s1634_s17 + $0x3f8] sm:$0xff] %v735_v26  ;;  %v742_v26 = vadd.f32 %v1646_v19, %v358_v17  ;;  %v364_v19 = vld [vmem:[%s1619_s15 + $0x460] sm:$0xff]  ;;  %v747_v2 = vadd.f32 %v1667_v32, %v363_v15  ;;  %v367_v27 = vld [vmem:[%s1619_s15 + $0x478] sm:$0xff]  ;;  %v750_v11 = vadd.f32 %v1682_v41, %v366_v24  ;;  %v369_v32 = vld [vmem:[%s1619_s15 + $0x488] sm:$0xff] }
  0xf7   : > { %992 = vst [vmem:[%s1634_s17 + $0x400] sm:$0xff] %v736_v39  ;;  %v743_v39 = vadd.f32 %v1651_v22, %v359_v34  ;;  %v365_v22 = vld [vmem:[%s1619_s15 + $0x468] sm:$0xff]  ;;  %v748_v61 = vadd.f32 %v1672_v35, %v364_v19  ;;  %v370_v35 = vld [vmem:[%s1619_s15 + $0x490] sm:$0xff]  ;;  %v372_v41 = vld [vmem:[%s1619_s15 + $0x4a0] sm:$0xff] }
  0xf8   : > { %993 = vst [vmem:[%s1634_s17 + $0x408] sm:$0xff] %v737_v48  ;;  %v746_v48 = vadd.f32 %v1664_v30, %v362_v13  ;;  %v368_v30 = vld [vmem:[%s1619_s15 + $0x480] sm:$0xff]  ;;  %v754_v34 = vadd.f32 %v1702_v53, %v370_v35  ;;  %v756_v40 = vadd.f32 %v1712_v59, %v372_v41  ;;  %v378_v59 = vld [vmem:[%s1619_s15 + $0x4d0] sm:$0xff] }
  0xf9   : > { %994 = vst [vmem:[%s1634_s17 + $0x410] sm:$0xff] %v738_v8  ;;  %v749_v8 = vadd.f32 %v1677_v38, %v365_v22  ;;  %v752_v17 = vadd.f32 %v1692_v47, %v368_v30  ;;  %v371_v38 = vld [vmem:[%s1619_s15 + $0x498] sm:$0xff]  ;;  %v374_v47 = vld [vmem:[%s1619_s15 + $0x4b0] sm:$0xff]  ;;  %v376_v53 = vld [vmem:[%s1619_s15 + $0x4c0] sm:$0xff]  ;;  %v762_v15 = vadd.f32 %v1742_v14, %v378_v59 }
  0xfa   : > { %995 = vst [vmem:[%s1634_s17 + $0x418] sm:$0xff] %v739_v45  ;;  %v751_v45 = vadd.f32 %v1687_v44, %v367_v27  ;;  %v373_v44 = vld [vmem:[%s1619_s15 + $0x4a8] sm:$0xff]  ;;  %v758_v54 = vadd.f32 %v1722_v1, %v374_v47  ;;  %v760_v13 = vadd.f32 %v1732_v7, %v376_v53  ;;  %v380_v1 = vld [vmem:[%s1619_s15 + $0x4e0] sm:$0xff]  ;;  %v382_v7 = vld [vmem:[%s1619_s15 + $0x4f0] sm:$0xff] }
  0xfb   : > { %996 = vst [vmem:[%s1634_s17 + $0x420] sm:$0xff] %v740_v25  ;;  %v753_v25 = vadd.f32 %v1697_v50, %v369_v32  ;;  %v375_v50 = vld [vmem:[%s1619_s15 + $0x4b8] sm:$0xff]  ;;  %v764_v19 = vadd.f32 %v1752_v23, %v380_v1  ;;  %v384_v14 = vld [vmem:[%s1619_s15 + $0x500] sm:$0xff]  ;;  %v766_v22 = vadd.f32 %v1762_v33, %v382_v7  ;;  %v386_v23 = vld [vmem:[%s1619_s15 + $0x510] sm:$0xff] }
  0xfc   : > { %997 = vst [vmem:[%s1634_s17 + $0x428] sm:$0xff] %v741_v31  ;;  %v755_v31 = vadd.f32 %v1707_v56, %v371_v38  ;;  %v377_v56 = vld [vmem:[%s1619_s15 + $0x4c8] sm:$0xff]  ;;  %v768_v24 = vadd.f32 %v1772_v42, %v384_v14  ;;  %v388_v33 = vld [vmem:[%s1619_s15 + $0x520] sm:$0xff]  ;;  %v770_v27 = vadd.f32 %v1782_v51, %v386_v23  ;;  %v390_v42 = vld [vmem:[%s1619_s15 + $0x530] sm:$0xff] }
  0xfd   : > { %998 = vst [vmem:[%s1634_s17 + $0x430] sm:$0xff] %v742_v26  ;;  %v757_v26 = vadd.f32 %v1717_v62, %v373_v44  ;;  %v379_v62 = vld [vmem:[%s1619_s15 + $0x4d8] sm:$0xff]  ;;  %v772_v30 = vadd.f32 %v1792_v60, %v388_v33  ;;  %v392_v51 = vld [vmem:[%s1619_s15 + $0x540] sm:$0xff]  ;;  %v774_v32 = vadd.f32 %v1802_v5, %v390_v42  ;;  %v394_v60 = vld [vmem:[%s1619_s15 + $0x550] sm:$0xff] }
  0xfe   : > { %999 = vst [vmem:[%s1634_s17 + $0x438] sm:$0xff] %v743_v39  ;;  %v759_v39 = vadd.f32 %v1727_v4, %v375_v50  ;;  %v381_v4 = vld [vmem:[%s1619_s15 + $0x4e8] sm:$0xff]  ;;  %v776_v35 = vadd.f32 %v1812_v16, %v392_v51  ;;  %v396_v5 = vld [vmem:[%s1619_s15 + $0x560] sm:$0xff]  ;;  %v778_v38 = vadd.f32 %v1822_v29, %v394_v60  ;;  %v398_v16 = vld [vmem:[%s1619_s15 + $0x570] sm:$0xff] }
  0xff   : > { %1000 = vst [vmem:[%s1634_s17 + $0x440] sm:$0xff] %v744_v52  ;;  %v761_v52 = vadd.f32 %v1737_v10, %v377_v56  ;;  %v383_v10 = vld [vmem:[%s1619_s15 + $0x4f8] sm:$0xff]  ;;  %v780_v41 = vadd.f32 %v1832_v43, %v396_v5  ;;  %v400_v29 = vld [vmem:[%s1619_s15 + $0x580] sm:$0xff]  ;;  %v782_v44 = vadd.f32 %v1842_v57, %v398_v16  ;;  %v402_v43 = vld [vmem:[%s1619_s15 + $0x590] sm:$0xff] }
 0x100   : > { %1001 = vst [vmem:[%s1634_s17 + $0x448] sm:$0xff] %v745_v20  ;;  %v763_v20 = vadd.f32 %v1747_v18, %v379_v62  ;;  %v385_v18 = vld [vmem:[%s1619_s15 + $0x508] sm:$0xff]  ;;  %v784_v47 = vadd.f32 %v1852_v6, %v400_v29  ;;  %v404_v57 = vld [vmem:[%s1619_s15 + $0x5a0] sm:$0xff]  ;;  %v406_v6 = vld [vmem:[%s1619_s15 + $0x5b0] sm:$0xff] }
 0x101   : > { %1002 = vst [vmem:[%s1634_s17 + $0x450] sm:$0xff] %v746_v48  ;;  %v765_v48 = vadd.f32 %v1757_v28, %v381_v4  ;;  %v387_v28 = vld [vmem:[%s1619_s15 + $0x518] sm:$0xff]  ;;  %v2840_v50 = vld [vmem:[#allocation11_spill] sm:$0xff]  ;;  %v2841_v53 = vld [vmem:[#allocation12_spill] sm:$0xff] }
 0x102   : > { %1003 = vst [vmem:[%s1634_s17 + $0x458] sm:$0xff] %v747_v2  ;;  %v767_v2 = vadd.f32 %v1767_v37, %v383_v10  ;;  %v389_v37 = vld [vmem:[%s1619_s15 + $0x528] sm:$0xff]  ;;  %v2842_v56 = vld [vmem:[#allocation13_spill] sm:$0xff]  ;;  %v2843_v59 = vld [vmem:[#allocation14_spill] sm:$0xff] }
 0x103   : > { %1004 = vst [vmem:[%s1634_s17 + $0x460] sm:$0xff] %v748_v61  ;;  %v769_v61 = vadd.f32 %v1777_v46, %v385_v18  ;;  %v391_v46 = vld [vmem:[%s1619_s15 + $0x538] sm:$0xff]  ;;  %v408_v62 = vld [vmem:[%s1619_s15 + $0x5c0] sm:$0xff]  ;;  %v2845_v4 = vld [vmem:[#allocation16_spill] sm:$0xff] }
 0x104   : > { %1005 = vst [vmem:[%s1634_s17 + $0x468] sm:$0xff] %v749_v8  ;;  %v771_v8 = vadd.f32 %v1787_v55, %v387_v28  ;;  %v393_v55 = vld [vmem:[%s1619_s15 + $0x548] sm:$0xff]  ;;  %v410_v7 = vld [vmem:[%s1619_s15 + $0x5d0] sm:$0xff]  ;;  %v2847_v14 = vld [vmem:[#allocation18_spill] sm:$0xff] }
 0x105   : > { %1006 = vst [vmem:[%s1634_s17 + $0x470] sm:$0xff] %v750_v11  ;;  %v773_v11 = vadd.f32 %v1797_v0, %v389_v37  ;;  %v395_v0 = vld [vmem:[%s1619_s15 + $0x558] sm:$0xff]  ;;  %v412_v18 = vld [vmem:[%s1619_s15 + $0x5e0] sm:$0xff]  ;;  %v2849_v28 = vld [vmem:[#allocation20_spill] sm:$0xff] }
 0x106   : > { %1007 = vst [vmem:[%s1634_s17 + $0x478] sm:$0xff] %v751_v45  ;;  %v775_v45 = vadd.f32 %v1807_v9, %v391_v46  ;;  %v397_v9 = vld [vmem:[%s1619_s15 + $0x568] sm:$0xff]  ;;  %v414_v33 = vld [vmem:[%s1619_s15 + $0x5f0] sm:$0xff]  ;;  %v2851_v42 = vld [vmem:[#allocation22_spill] sm:$0xff] }
 0x107   : > { %1008 = vst [vmem:[%s1634_s17 + $0x480] sm:$0xff] %v752_v17  ;;  %v777_v17 = vadd.f32 %v1817_v21, %v393_v55  ;;  %v399_v21 = vld [vmem:[%s1619_s15 + $0x578] sm:$0xff]  ;;  %v416_v46 = vld [vmem:[%s1619_s15 + $0x600] sm:$0xff]  ;;  %v2853_v55 = vld [vmem:[#allocation24_spill] sm:$0xff] }
 0x108   : > { %1009 = vst [vmem:[%s1634_s17 + $0x488] sm:$0xff] %v753_v25  ;;  %v779_v25 = vadd.f32 %v1827_v36, %v395_v0  ;;  %v401_v36 = vld [vmem:[%s1619_s15 + $0x588] sm:$0xff]  ;;  %v418_v60 = vld [vmem:[%s1619_s15 + $0x610] sm:$0xff]  ;;  %v2855_v5 = vld [vmem:[#allocation26_spill] sm:$0xff] }
 0x109   : > { %1010 = vst [vmem:[%s1634_s17 + $0x490] sm:$0xff] %v754_v34  ;;  %v781_v34 = vadd.f32 %v1837_v49, %v397_v9  ;;  %v403_v49 = vld [vmem:[%s1619_s15 + $0x598] sm:$0xff]  ;;  %v420_v9 = vld [vmem:[%s1619_s15 + $0x620] sm:$0xff]  ;;  %v422_v29 = vld [vmem:[%s1619_s15 + $0x630] sm:$0xff] }
 0x10a   : > { %1011 = vst [vmem:[%s1634_s17 + $0x498] sm:$0xff] %v755_v31  ;;  %v783_v31 = vadd.f32 %v1847_v63, %v399_v21  ;;  %v405_v63 = vld [vmem:[%s1619_s15 + $0x5a8] sm:$0xff] }
 0x10b   : > { %1012 = vst [vmem:[%s1634_s17 + $0x4a0] sm:$0xff] %v756_v40  ;;  %v785_v40 = vadd.f32 %v1857_v12, %v401_v36  ;;  %v407_v12 = vld [vmem:[%s1619_s15 + $0x5b8] sm:$0xff]  ;;  %v2857_v21 = vld [vmem:[#allocation28_spill] sm:$0xff] }
 0x10c   : > { %1013 = vst [vmem:[%s1634_s17 + $0x4a8] sm:$0xff] %v757_v26  ;;  %v786_v26 = vadd.f32 %v2840_v50, %v402_v43  ;;  %v2859_v43 = vld [vmem:[#allocation30_spill] sm:$0xff]  ;;  %v425_v50 = vld [vmem:[%s1619_s15 + $0x648] sm:$0xff] }
 0x10d   : > { %1014 = vst [vmem:[%s1634_s17 + $0x4b0] sm:$0xff] %v758_v54  ;;  %v787_v54 = vadd.f32 %v2841_v53, %v403_v49  ;;  %v424_v49 = vld [vmem:[%s1619_s15 + $0x640] sm:$0xff]  ;;  %v426_v53 = vld [vmem:[%s1619_s15 + $0x650] sm:$0xff] }
 0x10e   : > { %1015 = vst [vmem:[%s1634_s17 + $0x4b8] sm:$0xff] %v759_v39  ;;  %v788_v39 = vadd.f32 %v2842_v56, %v404_v57  ;;  %v427_v56 = vld [vmem:[%s1619_s15 + $0x658] sm:$0xff] }
 0x10f   : > { %1016 = vst [vmem:[%s1634_s17 + $0x4c0] sm:$0xff] %v760_v13  ;;  %v789_v13 = vadd.f32 %v2843_v59, %v405_v63  ;;  %v428_v59 = vld [vmem:[%s1619_s15 + $0x660] sm:$0xff] }
 0x110   : > { %1017 = vst [vmem:[%s1634_s17 + $0x4c8] sm:$0xff] %v761_v52  ;;  %v2844_v52 = vld [vmem:[#allocation15_spill] sm:$0xff] }
 0x111   : > { %1018 = vst [vmem:[%s1634_s17 + $0x4d0] sm:$0xff] %v762_v15  ;;  %v790_v1 = vadd.f32 %v2844_v52, %v406_v6  ;;  %v409_v15 = vld [vmem:[%s1619_s15 + $0x5c8] sm:$0xff] }
 0x112   : > { %1019 = vst [vmem:[%s1634_s17 + $0x4d8] sm:$0xff] %v763_v20  ;;  %v791_v20 = vadd.f32 %v2845_v4, %v407_v12  ;;  %v429_v52 = vld [vmem:[%s1619_s15 + $0x668] sm:$0xff]  ;;  %v430_v4 = vld [vmem:[%s1619_s15 + $0x670] sm:$0xff] }
 0x113   : > { %1020 = vst [vmem:[%s1634_s17 + $0x4e0] sm:$0xff] %v764_v19  ;;  %v2846_v19 = vld [vmem:[#allocation17_spill] sm:$0xff] }
 0x114   : > { %1021 = vst [vmem:[%s1634_s17 + $0x4e8] sm:$0xff] %v765_v48  ;;  %v792_v10 = vadd.f32 %v2846_v19, %v408_v62  ;;  %v411_v48 = vld [vmem:[%s1619_s15 + $0x5d8] sm:$0xff] }
 0x115   : > { %1022 = vst [vmem:[%s1634_s17 + $0x4f0] sm:$0xff] %v766_v22  ;;  %v793_v22 = vadd.f32 %v2847_v14, %v409_v15  ;;  %v431_v19 = vld [vmem:[%s1619_s15 + $0x678] sm:$0xff]  ;;  %v432_v14 = vld [vmem:[%s1619_s15 + $0x680] sm:$0xff] }
 0x116   : > { %1023 = vst [vmem:[%s1634_s17 + $0x4f8] sm:$0xff] %v767_v2  ;;  %v2848_v2 = vld [vmem:[#allocation19_spill] sm:$0xff] }
 0x117   : > { %1024 = vst [vmem:[%s1634_s17 + $0x500] sm:$0xff] %v768_v24  ;;  %v794_v23 = vadd.f32 %v2848_v2, %v410_v7  ;;  %v413_v24 = vld [vmem:[%s1619_s15 + $0x5e8] sm:$0xff] }
 0x118   : > { %1025 = vst [vmem:[%s1634_s17 + $0x508] sm:$0xff] %v769_v61  ;;  %v795_v61 = vadd.f32 %v2849_v28, %v411_v48  ;;  %v433_v2 = vld [vmem:[%s1619_s15 + $0x688] sm:$0xff]  ;;  %v434_v28 = vld [vmem:[%s1619_s15 + $0x690] sm:$0xff] }
 0x119   : > { %1026 = vst [vmem:[%s1634_s17 + $0x510] sm:$0xff] %v770_v27  ;;  %v2850_v27 = vld [vmem:[#allocation21_spill] sm:$0xff] }
 0x11a   : > { %1027 = vst [vmem:[%s1634_s17 + $0x518] sm:$0xff] %v771_v8  ;;  %v796_v37 = vadd.f32 %v2850_v27, %v412_v18  ;;  %v415_v8 = vld [vmem:[%s1619_s15 + $0x5f8] sm:$0xff] }
 0x11b   : > { %1028 = vst [vmem:[%s1634_s17 + $0x520] sm:$0xff] %v772_v30  ;;  %v797_v30 = vadd.f32 %v2851_v42, %v413_v24  ;;  %v435_v27 = vld [vmem:[%s1619_s15 + $0x698] sm:$0xff]  ;;  %v436_v42 = vld [vmem:[%s1619_s15 + $0x6a0] sm:$0xff] }
 0x11c   : > { %1029 = vst [vmem:[%s1634_s17 + $0x528] sm:$0xff] %v773_v11  ;;  %v2852_v11 = vld [vmem:[#allocation23_spill] sm:$0xff] }
 0x11d   : > { %1030 = vst [vmem:[%s1634_s17 + $0x530] sm:$0xff] %v774_v32  ;;  %v798_v51 = vadd.f32 %v2852_v11, %v414_v33  ;;  %v417_v32 = vld [vmem:[%s1619_s15 + $0x608] sm:$0xff] }
 0x11e   : > { %1031 = vst [vmem:[%s1634_s17 + $0x538] sm:$0xff] %v775_v45  ;;  %v799_v45 = vadd.f32 %v2853_v55, %v415_v8  ;;  %v437_v11 = vld [vmem:[%s1619_s15 + $0x6a8] sm:$0xff]  ;;  %v438_v55 = vld [vmem:[%s1619_s15 + $0x6b0] sm:$0xff] }
 0x11f   : > { %1032 = vst [vmem:[%s1634_s17 + $0x540] sm:$0xff] %v776_v35  ;;  %v2854_v35 = vld [vmem:[#allocation25_spill] sm:$0xff] }
 0x120   : > { %1033 = vst [vmem:[%s1634_s17 + $0x548] sm:$0xff] %v777_v17  ;;  %v800_v0 = vadd.f32 %v2854_v35, %v416_v46  ;;  %v419_v17 = vld [vmem:[%s1619_s15 + $0x618] sm:$0xff] }
 0x121   : > { %1034 = vst [vmem:[%s1634_s17 + $0x550] sm:$0xff] %v778_v38  ;;  %v801_v38 = vadd.f32 %v2855_v5, %v417_v32  ;;  %v439_v35 = vld [vmem:[%s1619_s15 + $0x6b8] sm:$0xff]  ;;  %v440_v5 = vld [vmem:[%s1619_s15 + $0x6c0] sm:$0xff] }
 0x122   : > { %1035 = vst [vmem:[%s1634_s17 + $0x558] sm:$0xff] %v779_v25  ;;  %v2856_v25 = vld [vmem:[#allocation27_spill] sm:$0xff] }
 0x123   : > { %1036 = vst [vmem:[%s1634_s17 + $0x560] sm:$0xff] %v780_v41  ;;  %v802_v16 = vadd.f32 %v2856_v25, %v418_v60  ;;  %v421_v41 = vld [vmem:[%s1619_s15 + $0x628] sm:$0xff] }
 0x124   : > { %1037 = vst [vmem:[%s1634_s17 + $0x568] sm:$0xff] %v781_v34  ;;  %v803_v34 = vadd.f32 %v2857_v21, %v419_v17  ;;  %v441_v25 = vld [vmem:[%s1619_s15 + $0x6c8] sm:$0xff]  ;;  %v442_v21 = vld [vmem:[%s1619_s15 + $0x6d0] sm:$0xff] }
 0x125   : > { %1038 = vst [vmem:[%s1634_s17 + $0x570] sm:$0xff] %v782_v44  ;;  %v2858_v44 = vld [vmem:[#allocation29_spill] sm:$0xff] }
 0x126   : > { %1039 = vst [vmem:[%s1634_s17 + $0x578] sm:$0xff] %v783_v31  ;;  %v804_v36 = vadd.f32 %v2858_v44, %v420_v9  ;;  %v423_v31 = vld [vmem:[%s1619_s15 + $0x638] sm:$0xff] }
 0x127   : > { %1040 = vst [vmem:[%s1634_s17 + $0x580] sm:$0xff] %v784_v47  ;;  %v805_v47 = vadd.f32 %v2859_v43, %v421_v41  ;;  %v443_v44 = vld [vmem:[%s1619_s15 + $0x6d8] sm:$0xff]  ;;  %v444_v43 = vld [vmem:[%s1619_s15 + $0x6e0] sm:$0xff] }
 0x128   : > { %1041 = vst [vmem:[%s1634_s17 + $0x588] sm:$0xff] %v785_v40  ;;  %v2860_v40 = vld [vmem:[#allocation31_spill] sm:$0xff] }
 0x129   : > { %1042 = vst [vmem:[%s1634_s17 + $0x590] sm:$0xff] %v786_v26  ;;  %v806_v57 = vadd.f32 %v2860_v40, %v422_v29  ;;  %v2861_v26 = vld [vmem:[#allocation32_spill] sm:$0xff] }
 0x12a   : > { %1043 = vst [vmem:[%s1634_s17 + $0x598] sm:$0xff] %v787_v54  ;;  %v807_v63 = vadd.f32 %v2861_v26, %v423_v31  ;;  %v2862_v54 = vld [vmem:[#allocation33_spill] sm:$0xff]  ;;  %v445_v40 = vld [vmem:[%s1619_s15 + $0x6e8] sm:$0xff] }
 0x12b   : > { %1044 = vst [vmem:[%s1634_s17 + $0x5a0] sm:$0xff] %v788_v39  ;;  %v808_v6 = vadd.f32 %v2862_v54, %v424_v49  ;;  %v2863_v39 = vld [vmem:[#allocation34_spill] sm:$0xff]  ;;  %v446_v26 = vld [vmem:[%s1619_s15 + $0x6f0] sm:$0xff] }
 0x12c   : > { %1045 = vst [vmem:[%s1634_s17 + $0x5a8] sm:$0xff] %v789_v13  ;;  %v809_v12 = vadd.f32 %v2863_v39, %v425_v50  ;;  %v2864_v13 = vld [vmem:[#allocation35_spill] sm:$0xff]  ;;  %v447_v54 = vld [vmem:[%s1619_s15 + $0x6f8] sm:$0xff] }
 0x12d   : > { %1046 = vst [vmem:[%s1634_s17 + $0x5b0] sm:$0xff] %v790_v1  ;;  %v810_v62 = vadd.f32 %v2864_v13, %v426_v53  ;;  %v2865_v1 = vld [vmem:[#allocation36_spill] sm:$0xff]  ;;  %v448_v39 = vld [vmem:[%s1619_s15 + $0x700] sm:$0xff] }
 0x12e   : > { %1047 = vst [vmem:[%s1634_s17 + $0x5b8] sm:$0xff] %v791_v20  ;;  %v811_v15 = vadd.f32 %v2865_v1, %v427_v56  ;;  %v2866_v20 = vld [vmem:[#allocation37_spill] sm:$0xff]  ;;  %v449_v13 = vld [vmem:[%s1619_s15 + $0x708] sm:$0xff] }
 0x12f   : > { %1048 = vst [vmem:[%s1634_s17 + $0x5c0] sm:$0xff] %v792_v10  ;;  %v812_v7 = vadd.f32 %v2866_v20, %v428_v59  ;;  %v2867_v10 = vld [vmem:[#allocation38_spill] sm:$0xff]  ;;  %v450_v1 = vld [vmem:[%s1619_s15 + $0x710] sm:$0xff] }
 0x130   : > { %1049 = vst [vmem:[%s1634_s17 + $0x5c8] sm:$0xff] %v793_v22  ;;  %v813_v48 = vadd.f32 %v2867_v10, %v429_v52  ;;  %v2868_v22 = vld [vmem:[#allocation39_spill] sm:$0xff]  ;;  %v451_v20 = vld [vmem:[%s1619_s15 + $0x718] sm:$0xff] }
 0x131   : > { %1050 = vst [vmem:[%s1634_s17 + $0x5d0] sm:$0xff] %v794_v23  ;;  %v814_v18 = vadd.f32 %v2868_v22, %v430_v4  ;;  %v2869_v23 = vld [vmem:[#allocation40_spill] sm:$0xff]  ;;  %v452_v10 = vld [vmem:[%s1619_s15 + $0x720] sm:$0xff] }
 0x132   : > { %1051 = vst [vmem:[%s1634_s17 + $0x5d8] sm:$0xff] %v795_v61  ;;  %v815_v24 = vadd.f32 %v2869_v23, %v431_v19  ;;  %v2870_v61 = vld [vmem:[#allocation41_spill] sm:$0xff]  ;;  %v453_v22 = vld [vmem:[%s1619_s15 + $0x728] sm:$0xff] }
 0x133   : > { %1052 = vst [vmem:[%s1634_s17 + $0x5e0] sm:$0xff] %v796_v37  ;;  %v816_v33 = vadd.f32 %v2870_v61, %v432_v14  ;;  %v2871_v37 = vld [vmem:[#allocation42_spill] sm:$0xff]  ;;  %v454_v23 = vld [vmem:[%s1619_s15 + $0x730] sm:$0xff] }
 0x134   : > { %1053 = vst [vmem:[%s1634_s17 + $0x5e8] sm:$0xff] %v797_v30  ;;  %v817_v8 = vadd.f32 %v2871_v37, %v433_v2  ;;  %v2872_v30 = vld [vmem:[#allocation43_spill] sm:$0xff]  ;;  %v455_v61 = vld [vmem:[%s1619_s15 + $0x738] sm:$0xff] }
 0x135   : > { %1054 = vst [vmem:[%s1634_s17 + $0x5f0] sm:$0xff] %v798_v51  ;;  %v818_v46 = vadd.f32 %v2872_v30, %v434_v28  ;;  %v2873_v51 = vld [vmem:[#allocation44_spill] sm:$0xff]  ;;  %v456_v37 = vld [vmem:[%s1619_s15 + $0x740] sm:$0xff] }
 0x136   : > { %1055 = vst [vmem:[%s1634_s17 + $0x5f8] sm:$0xff] %v799_v45  ;;  %v819_v32 = vadd.f32 %v2873_v51, %v435_v27  ;;  %v2874_v45 = vld [vmem:[#allocation45_spill] sm:$0xff]  ;;  %v457_v30 = vld [vmem:[%s1619_s15 + $0x748] sm:$0xff] }
 0x137   : > { %1056 = vst [vmem:[%s1634_s17 + $0x600] sm:$0xff] %v800_v0  ;;  %v820_v60 = vadd.f32 %v2874_v45, %v436_v42  ;;  %v2875_v0 = vld [vmem:[#allocation46_spill] sm:$0xff]  ;;  %v458_v51 = vld [vmem:[%s1619_s15 + $0x750] sm:$0xff] }
 0x138   : > { %1057 = vst [vmem:[%s1634_s17 + $0x608] sm:$0xff] %v801_v38  ;;  %v821_v17 = vadd.f32 %v2875_v0, %v437_v11  ;;  %v2876_v38 = vld [vmem:[#allocation47_spill] sm:$0xff]  ;;  %v459_v45 = vld [vmem:[%s1619_s15 + $0x758] sm:$0xff] }
 0x139   : > { %1058 = vst [vmem:[%s1634_s17 + $0x610] sm:$0xff] %v802_v16  ;;  %v822_v9 = vadd.f32 %v2876_v38, %v438_v55  ;;  %v2877_v16 = vld [vmem:[#allocation48_spill] sm:$0xff]  ;;  %v460_v0 = vld [vmem:[%s1619_s15 + $0x760] sm:$0xff] }
 0x13a   : > { %1059 = vst [vmem:[%s1634_s17 + $0x618] sm:$0xff] %v803_v34  ;;  %v823_v41 = vadd.f32 %v2877_v16, %v439_v35  ;;  %v2878_v34 = vld [vmem:[#allocation49_spill] sm:$0xff]  ;;  %v461_v38 = vld [vmem:[%s1619_s15 + $0x768] sm:$0xff] }
 0x13b   : > { %1060 = vst [vmem:[%s1634_s17 + $0x620] sm:$0xff] %v804_v36  ;;  %v824_v29 = vadd.f32 %v2878_v34, %v440_v5  ;;  %v2879_v36 = vld [vmem:[#allocation50_spill] sm:$0xff]  ;;  %v462_v16 = vld [vmem:[%s1619_s15 + $0x770] sm:$0xff] }
 0x13c   : > { %1061 = vst [vmem:[%s1634_s17 + $0x628] sm:$0xff] %v805_v47  ;;  %v825_v31 = vadd.f32 %v2879_v36, %v441_v25  ;;  %v2880_v47 = vld [vmem:[#allocation51_spill] sm:$0xff]  ;;  %v463_v34 = vld [vmem:[%s1619_s15 + $0x778] sm:$0xff] }
 0x13d   : > { %1062 = vst [vmem:[%s1634_s17 + $0x630] sm:$0xff] %v806_v57  ;;  %v826_v49 = vadd.f32 %v2880_v47, %v442_v21  ;;  %v2881_v57 = vld [vmem:[#allocation52_spill] sm:$0xff]  ;;  %v464_v36 = vld [vmem:[%s1619_s15 + $0x780] sm:$0xff] }
 0x13e   : > { %1063 = vst [vmem:[%s1634_s17 + $0x638] sm:$0xff] %v807_v63  ;;  %v827_v50 = vadd.f32 %v2881_v57, %v443_v44  ;;  %v2882_v63 = vld [vmem:[#allocation53_spill] sm:$0xff]  ;;  %v465_v47 = vld [vmem:[%s1619_s15 + $0x788] sm:$0xff] }
 0x13f   : > { %1064 = vst [vmem:[%s1634_s17 + $0x640] sm:$0xff] %v808_v6  ;;  %v828_v53 = vadd.f32 %v2882_v63, %v444_v43  ;;  %v2883_v6 = vld [vmem:[#allocation54_spill] sm:$0xff]  ;;  %v466_v57 = vld [vmem:[%s1619_s15 + $0x790] sm:$0xff] }
 0x140   : > { %1065 = vst [vmem:[%s1634_s17 + $0x648] sm:$0xff] %v809_v12  ;;  %v829_v56 = vadd.f32 %v2883_v6, %v445_v40  ;;  %v2884_v12 = vld [vmem:[#allocation55_spill] sm:$0xff]  ;;  %v467_v63 = vld [vmem:[%s1619_s15 + $0x798] sm:$0xff] }
 0x141   : > { %1066 = vst [vmem:[%s1634_s17 + $0x650] sm:$0xff] %v810_v62  ;;  %v830_v59 = vadd.f32 %v2884_v12, %v446_v26  ;;  %v2885_v62 = vld [vmem:[#allocation56_spill] sm:$0xff]  ;;  %v468_v6 = vld [vmem:[%s1619_s15 + $0x7a0] sm:$0xff] }
 0x142   : > { %1067 = vst [vmem:[%s1634_s17 + $0x658] sm:$0xff] %v811_v15  ;;  %v831_v52 = vadd.f32 %v2885_v62, %v447_v54  ;;  %v2886_v15 = vld [vmem:[#allocation57_spill] sm:$0xff]  ;;  %v469_v12 = vld [vmem:[%s1619_s15 + $0x7a8] sm:$0xff] }
 0x143   : > { %1068 = vst [vmem:[%s1634_s17 + $0x660] sm:$0xff] %v812_v7  ;;  %v832_v4 = vadd.f32 %v2886_v15, %v448_v39  ;;  %v2887_v7 = vld [vmem:[#allocation58_spill] sm:$0xff]  ;;  %v470_v62 = vld [vmem:[%s1619_s15 + $0x7b0] sm:$0xff] }
 0x144   : > { %1069 = vst [vmem:[%s1634_s17 + $0x668] sm:$0xff] %v813_v48  ;;  %v833_v19 = vadd.f32 %v2887_v7, %v449_v13  ;;  %v2888_v48 = vld [vmem:[#allocation59_spill] sm:$0xff]  ;;  %v471_v15 = vld [vmem:[%s1619_s15 + $0x7b8] sm:$0xff] }
 0x145   : > { %1070 = vst [vmem:[%s1634_s17 + $0x670] sm:$0xff] %v814_v18  ;;  %v834_v14 = vadd.f32 %v2888_v48, %v450_v1  ;;  %v2889_v18 = vld [vmem:[#allocation60_spill] sm:$0xff]  ;;  %v472_v7 = vld [vmem:[%s1619_s15 + $0x7c0] sm:$0xff] }
 0x146   : > { %1071 = vst [vmem:[%s1634_s17 + $0x678] sm:$0xff] %v815_v24  ;;  %v835_v2 = vadd.f32 %v2889_v18, %v451_v20  ;;  %v2890_v24 = vld [vmem:[#allocation61_spill] sm:$0xff]  ;;  %v473_v48 = vld [vmem:[%s1619_s15 + $0x7c8] sm:$0xff] }
 0x147   : > { %1072 = vst [vmem:[%s1634_s17 + $0x680] sm:$0xff] %v816_v33  ;;  %v836_v28 = vadd.f32 %v2890_v24, %v452_v10  ;;  %v2891_v33 = vld [vmem:[#allocation62_spill] sm:$0xff]  ;;  %v474_v18 = vld [vmem:[%s1619_s15 + $0x7d0] sm:$0xff] }
 0x148   : > { %1073 = vst [vmem:[%s1634_s17 + $0x688] sm:$0xff] %v817_v8  ;;  %v837_v27 = vadd.f32 %v2891_v33, %v453_v22  ;;  %v2892_v8 = vld [vmem:[#allocation63_spill] sm:$0xff]  ;;  %v475_v24 = vld [vmem:[%s1619_s15 + $0x7d8] sm:$0xff] }
 0x149   : > { %1074 = vst [vmem:[%s1634_s17 + $0x690] sm:$0xff] %v818_v46  ;;  %v838_v42 = vadd.f32 %v2892_v8, %v454_v23  ;;  %v2893_v46 = vld [vmem:[#allocation64_spill] sm:$0xff]  ;;  %v476_v33 = vld [vmem:[%s1619_s15 + $0x7e0] sm:$0xff] }
 0x14a   : > { %1075 = vst [vmem:[%s1634_s17 + $0x698] sm:$0xff] %v819_v32  ;;  %v839_v11 = vadd.f32 %v2893_v46, %v455_v61  ;;  %v2894_v32 = vld [vmem:[#allocation65_spill] sm:$0xff]  ;;  %v477_v8 = vld [vmem:[%s1619_s15 + $0x7e8] sm:$0xff] }
 0x14b   : > { %1076 = vst [vmem:[%s1634_s17 + $0x6a0] sm:$0xff] %v820_v60  ;;  %v840_v55 = vadd.f32 %v2894_v32, %v456_v37  ;;  %v2895_v60 = vld [vmem:[#allocation66_spill] sm:$0xff]  ;;  %v478_v46 = vld [vmem:[%s1619_s15 + $0x7f0] sm:$0xff] }
 0x14c   : > { %1077 = vst [vmem:[%s1634_s17 + $0x6a8] sm:$0xff] %v821_v17  ;;  %v841_v35 = vadd.f32 %v2895_v60, %v457_v30  ;;  %v2896_v17 = vld [vmem:[#allocation67_spill] sm:$0xff]  ;;  %v479_v32 = vld [vmem:[%s1619_s15 + $0x7f8] sm:$0xff] }
 0x14d   : > { %1078 = vst [vmem:[%s1634_s17 + $0x6b0] sm:$0xff] %v822_v9  ;;  %v842_v5 = vadd.f32 %v2896_v17, %v458_v51  ;;  %v2897_v9 = vld [vmem:[#allocation68_spill] sm:$0xff]  ;;  %v2915_v60 = vld [vmem:[#allocation86_spill] sm:$0xff] }
 0x14e   : > { %1079 = vst [vmem:[%s1634_s17 + $0x6b8] sm:$0xff] %v823_v41  ;;  %v843_v25 = vadd.f32 %v2897_v9, %v459_v45  ;;  %v2898_v41 = vld [vmem:[#allocation69_spill] sm:$0xff]  ;;  %v862_v45 = vadd.f32 %v2242_v3, %v478_v46 }
 0x14f   : > { %1080 = vst [vmem:[%s1634_s17 + $0x6c0] sm:$0xff] %v824_v29  ;;  %v844_v21 = vadd.f32 %v2898_v41, %v460_v0  ;;  %v2899_v29 = vld [vmem:[#allocation70_spill] sm:$0xff] }
 0x150   : > { %1081 = vst [vmem:[%s1634_s17 + $0x6c8] sm:$0xff] %v825_v31  ;;  %v845_v44 = vadd.f32 %v2899_v29, %v461_v38  ;;  %v2900_v31 = vld [vmem:[#allocation71_spill] sm:$0xff] }
 0x151   : > { %1082 = vst [vmem:[%s1634_s17 + $0x6d0] sm:$0xff] %v826_v49  ;;  %v846_v43 = vadd.f32 %v2900_v31, %v462_v16  ;;  %v2901_v49 = vld [vmem:[#allocation72_spill] sm:$0xff] }
 0x152   : > { %1083 = vst [vmem:[%s1634_s17 + $0x6d8] sm:$0xff] %v827_v50  ;;  %v847_v40 = vadd.f32 %v2901_v49, %v463_v34  ;;  %v2902_v50 = vld [vmem:[#allocation73_spill] sm:$0xff] }
 0x153   : > { %1084 = vst [vmem:[%s1634_s17 + $0x6e0] sm:$0xff] %v828_v53  ;;  %v848_v26 = vadd.f32 %v2902_v50, %v464_v36  ;;  %v2903_v53 = vld [vmem:[#allocation74_spill] sm:$0xff] }
 0x154   : > { %1085 = vst [vmem:[%s1634_s17 + $0x6e8] sm:$0xff] %v829_v56  ;;  %v849_v54 = vadd.f32 %v2903_v53, %v465_v47  ;;  %v2904_v56 = vld [vmem:[#allocation75_spill] sm:$0xff] }
 0x155   : > { %1086 = vst [vmem:[%s1634_s17 + $0x6f0] sm:$0xff] %v830_v59  ;;  %v850_v39 = vadd.f32 %v2904_v56, %v466_v57  ;;  %v2905_v59 = vld [vmem:[#allocation76_spill] sm:$0xff] }
 0x156   : > { %1087 = vst [vmem:[%s1634_s17 + $0x6f8] sm:$0xff] %v831_v52  ;;  %v851_v13 = vadd.f32 %v2905_v59, %v467_v63  ;;  %v2906_v52 = vld [vmem:[#allocation77_spill] sm:$0xff] }
 0x157   : > { %1088 = vst [vmem:[%s1634_s17 + $0x700] sm:$0xff] %v832_v4  ;;  %v852_v1 = vadd.f32 %v2906_v52, %v468_v6  ;;  %v2907_v4 = vld [vmem:[#allocation78_spill] sm:$0xff] }
 0x158   : > { %1089 = vst [vmem:[%s1634_s17 + $0x708] sm:$0xff] %v833_v19  ;;  %v853_v20 = vadd.f32 %v2907_v4, %v469_v12  ;;  %v2908_v19 = vld [vmem:[#allocation79_spill] sm:$0xff] }
 0x159   : > { %1090 = vst [vmem:[%s1634_s17 + $0x710] sm:$0xff] %v834_v14  ;;  %v854_v10 = vadd.f32 %v2908_v19, %v470_v62  ;;  %v2909_v14 = vld [vmem:[#allocation80_spill] sm:$0xff] }
 0x15a   : > { %1091 = vst [vmem:[%s1634_s17 + $0x718] sm:$0xff] %v835_v2  ;;  %v855_v22 = vadd.f32 %v2909_v14, %v471_v15  ;;  %v2910_v2 = vld [vmem:[#allocation81_spill] sm:$0xff] }
 0x15b   : > { %1092 = vst [vmem:[%s1634_s17 + $0x720] sm:$0xff] %v836_v28  ;;  %v856_v23 = vadd.f32 %v2910_v2, %v472_v7  ;;  %v2911_v28 = vld [vmem:[#allocation82_spill] sm:$0xff] }
 0x15c   : > { %1093 = vst [vmem:[%s1634_s17 + $0x728] sm:$0xff] %v837_v27  ;;  %v857_v61 = vadd.f32 %v2911_v28, %v473_v48  ;;  %v2912_v27 = vld [vmem:[#allocation83_spill] sm:$0xff] }
 0x15d   : > { %1094 = vst [vmem:[%s1634_s17 + $0x730] sm:$0xff] %v838_v42  ;;  %v858_v37 = vadd.f32 %v2912_v27, %v474_v18  ;;  %v2913_v42 = vld [vmem:[#allocation84_spill] sm:$0xff] }
 0x15e   : > { %1095 = vst [vmem:[%s1634_s17 + $0x738] sm:$0xff] %v839_v11  ;;  %v859_v30 = vadd.f32 %v2913_v42, %v475_v24  ;;  %v2914_v11 = vld [vmem:[#allocation85_spill] sm:$0xff] }
 0x15f   : > { %1096 = vst [vmem:[%s1634_s17 + $0x740] sm:$0xff] %v840_v55  ;;  %v860_v51 = vadd.f32 %v2914_v11, %v476_v33  ;;  %v861_v55 = vadd.f32 %v2237_v58, %v477_v8 }
 0x160   : > { %1097 = vst [vmem:[%s1634_s17 + $0x748] sm:$0xff] %v841_v35  ;;  %v863_v35 = vadd.f32 %v2915_v60, %v479_v32 }
 0x161   : > { %1098 = vst [vmem:[%s1634_s17 + $0x750] sm:$0xff] %v842_v5 }
 0x162   : > { %1099 = vst [vmem:[%s1634_s17 + $0x758] sm:$0xff] %v843_v25 }
 0x163   : > { %1100 = vst [vmem:[%s1634_s17 + $0x760] sm:$0xff] %v844_v21 }
 0x164   : > { %1101 = vst [vmem:[%s1634_s17 + $0x768] sm:$0xff] %v845_v44 }
 0x165   : > { %1102 = vst [vmem:[%s1634_s17 + $0x770] sm:$0xff] %v846_v43 }
 0x166   : > { %1103 = vst [vmem:[%s1634_s17 + $0x778] sm:$0xff] %v847_v40 }
 0x167   : > { %1104 = vst [vmem:[%s1634_s17 + $0x780] sm:$0xff] %v848_v26 }
 0x168   : > { %1105 = vst [vmem:[%s1634_s17 + $0x788] sm:$0xff] %v849_v54 }
 0x169   : > { %1106 = vst [vmem:[%s1634_s17 + $0x790] sm:$0xff] %v850_v39 }
 0x16a   : > { %1107 = vst [vmem:[%s1634_s17 + $0x798] sm:$0xff] %v851_v13 }
 0x16b   : > { %1108 = vst [vmem:[%s1634_s17 + $0x7a0] sm:$0xff] %v852_v1 }
 0x16c   : > { %1109 = vst [vmem:[%s1634_s17 + $0x7a8] sm:$0xff] %v853_v20 }
 0x16d   : > { %1110 = vst [vmem:[%s1634_s17 + $0x7b0] sm:$0xff] %v854_v10 }
 0x16e   : > { %1111 = vst [vmem:[%s1634_s17 + $0x7b8] sm:$0xff] %v855_v22 }
 0x16f   : > { %1112 = vst [vmem:[%s1634_s17 + $0x7c0] sm:$0xff] %v856_v23 }
 0x170   : > { %1113 = vst [vmem:[%s1634_s17 + $0x7c8] sm:$0xff] %v857_v61 }
 0x171   : > { %1114 = vst [vmem:[%s1634_s17 + $0x7d0] sm:$0xff] %v858_v37 }
 0x172   : > { %1115 = vst [vmem:[%s1634_s17 + $0x7d8] sm:$0xff] %v859_v30 }
 0x173   : > { %1116 = vst [vmem:[%s1634_s17 + $0x7e0] sm:$0xff] %v860_v51 }
 0x174   : > { %1117 = vst [vmem:[%s1634_s17 + $0x7e8] sm:$0xff] %v861_v55 }
 0x175   : > { %1118 = vst [vmem:[%s1634_s17 + $0x7f0] sm:$0xff] %v862_v45 }
 0x176   : > { %1119 = vst [vmem:[%s1634_s17 + $0x7f8] sm:$0xff] %v863_v35 }
 0x177   : > { %1429 = shalt.err (!%p1426_p0)
}
 0x178   : > { %s1493_s30 = smov 128   ;;  %s1494_s5 = smov 8  }
 0x179   : > { %1267 = dma.vmem_to_hbm [thread:$0]  (%p1592_p5), %s1137_s28, 32768, %s1139_s3, %s1121_s6, %s1493_s30, %s1493_s30, %s1494_s5  }
 0x17a PF: > { %s1153_s7 = sand.u32 1, %s1468_s9   ;;  %p1278_p3 = pnand %p1242_p11, %p1559_p6 }
 0x17b   : > { %s1154_s15 = scalar_lea.sflag [#allocation4], %s1153_s7 }
 0x17c   : > { %p1279_p7 = pneg %p1278_p3 }
 0x17e   : > { %1463 = dma.done.wait (%p1279_p7), %s1154_s15, 32768  }
 0x17f   : > { %1465 = vsyncadd (%p1279_p7), %s1154_s15, 4294934528  ;;  %s19_s14 = sadd.s32 1, %s1488_s14   ;;  %s2916_s9 = smov %s1472_s10 }
 0x180   : > { %p16_p9 = scmp.ge.s32.totalorder %s19_s14, 4   ;;  %s2917_s10 = smov %s1476_s11 }
 0x181   : > { %s2918_s11 = smov %s1601_s8  ;;  %s2919_s12 = smov %s1484_s13 }
 0x182   : > { %s2920_s13 = smov %s2922_s29  ;;  %18 = sbr.rel (!%p16_p9) target bundleno = 7 (0x7), region = 78 }
 0x187   :  { %1160 = vsyncpa [#allocation3], 1 }
 0x188   :  { %1162 = vsyncpa [#allocation3 + $0x1], 1 }
 0x189   :  { %1163 = vsyncpa [#allocation6], 1 }
 0x18a   :  { %1164 = vsyncpa [#allocation4], 1 }
 0x18b   :  { %1166 = vsyncpa [#allocation4 + $0x1], 1 }

</bundles_post_ra>
